<compile_context>
chip_gen: v6e
topology: v6e:2x2x1
jax: 0.10.0
libtpu: 0.0.40
codegen_flags: <defaults>
</compile_context>

<pallas_src>
import functools

import jax
import jax.numpy as jnp
from jax.experimental import pallas as pl
from jax.experimental.pallas import tpu as pltpu

EPS = 1e-5
NEG_SLOPE = 0.2


def _round_up(x, m):
    return (x + m - 1) // m * m


def _vmem_limit_bytes():
    """85% of physical VMEM (headroom for compiler scratch); None -> compiler default."""
    try:
        cap = pltpu.get_tpu_info().vmem_capacity_bytes
        if cap and cap > 0:
            return int(cap * 0.85)
    except Exception:
        pass
    return None


# ---------------------------------------------------------------------------
# Fused kernel: InstanceNorm3d (no affine) + LeakyReLU(0.2) + 3x3x3 conv (s=1, p=1, bias).
#   x_ref   : (1, Cin, DHW_pad)      f32   -- one batch element, flattened (d,h,w) on lanes
#   w_ref   : (Cout_p, K_pad)        bf16  -- taps merged into the contraction, K = 27*Cin
#   b_ref   : (Cout_p, 1)            f32
#   m_ref   : (27, DHW_pad)          bf16  -- per-tap boundary masks (0/1)
#   o_ref   : (1, Cout_p, DHW_pad)   f32   -- lane-dense, unpadded spatial layout
#   halo_ref: (Cin, DHW_pad + 2*halo) bf16 scratch -- normalized activation + zero halo
#   stk_ref : (K_pad, DHW_pad)       bf16 scratch -- VMEM-only stacked (im2col) operand
# ---------------------------------------------------------------------------
def _fused_kernel(x_ref, w_ref, b_ref, m_ref, o_ref, halo_ref, stk_ref, *,
                  dhw, halo, starts, cin, k_pad):
    dhw_pad = x_ref.shape[-1]

    # ---- InstanceNorm (biased variance, divisor = D*H*W) + LeakyReLU, all in f32 on VPU.
    x = x_ref[0].astype(jnp.float32)                              # (Cin, DHW_pad)
    inv_n = 1.0 / dhw
    mean = jnp.sum(x, axis=-1, keepdims=True) * inv_n             # pad lanes are zero
    ex2 = jnp.sum(x * x, axis=-1, keepdims=True) * inv_n
    var = ex2 - mean * mean
    xn = (x - mean) * jax.lax.rsqrt(var + EPS)
    y = jnp.where(xn >= 0, xn, NEG_SLOPE * xn).astype(jnp.bfloat16)

    # ---- Stage normalized activation into a halo'd scratch (zero edges -> shifts read 0).
    halo_ref[:, :halo] = jnp.zeros((cin, halo), jnp.bfloat16)
    halo_ref[:, halo + dhw_pad:halo + dhw_pad + halo] = jnp.zeros((cin, halo), jnp.bfloat16)
    halo_ref[:, halo:halo + dhw_pad] = y

    # ---- Build the stacked operand: 27 static lane shifts, masked at volume boundaries.
    for t, s in enumerate(starts):                                # fully unrolled (27 taps)
        x_t = halo_ref[:, s:s + dhw_pad]                          # (Cin, DHW_pad) bf16
        stk_ref[t * cin:(t + 1) * cin, :] = x_t * m_ref[t:t + 1, :]
    if k_pad > 27 * cin:                                          # zero K padding rows
        stk_ref[27 * cin:, :] = jnp.zeros((k_pad - 27 * cin, dhw_pad), jnp.bfloat16)

    # ---- One MXU matmul, K = 27*Cin, f32 accumulation; bias folded once per tile.
    acc = jnp.dot(w_ref[...], stk_ref[...], preferred_element_type=jnp.float32)
    o_ref[0] = (acc + b_ref[...].astype(jnp.float32)).astype(o_ref.dtype)


# ---------------------------------------------------------------------------
# EnBlock forward:  InstanceNorm3d -> LeakyReLU(0.2) -> Conv3d(3x3x3, s=1, p=1, bias)
# ---------------------------------------------------------------------------
def en_block_forward(x_ncdhw, weight, bias):
    n, cin, d, h, w = x_ncdhw.shape
    cout = weight.shape[0]
    dhw = d * h * w
    dhw_pad = _round_up(dhw, 128)          # lane-dense output width (512 for 8^3 -> no pad)
    cout_p = _round_up(cout, 8)            # sublane-aligned output channels
    k = 27 * cin
    k_pad = _round_up(k, 8)                # MXU-friendly contraction depth
    halo = h * w + w + 1                   # max |flattened tap offset|

    x_flat = x_ncdhw.reshape(n, cin, dhw)  # free reshape, NCDHW is contiguous
    if dhw_pad != dhw:
        x_flat = jnp.pad(x_flat, ((0, 0), (0, 0), (0, dhw_pad - dhw)))

    # Weights: (Cout, Cin, kd, kh, kw) -> (Cout_p, 27*Cin) bf16 with K layout (kd,kh,kw,ci)
    # matching the stacked operand's row order; bias -> (Cout_p, 1) f32.
    w_mat = jnp.transpose(weight, (0, 2, 3, 4, 1)).reshape(cout, k)
    w_mat = jnp.pad(w_mat, ((0, cout_p - cout), (0, k_pad - k))).astype(jnp.bfloat16)
    b_col = jnp.pad(bias, (0, cout_p - cout)).reshape(cout_p, 1).astype(jnp.float32)

    # Per-tap boundary masks over the flattened (d,h,w) lane axis + static tap offsets.
    j = jnp.arange(dhw_pad, dtype=jnp.int32)
    dj = j // (h * w)
    rj = j % (h * w)
    hj = rj // w
    wj = rj % w
    valid = j < dhw
    mask_rows, starts = [], []
    for kd in range(3):
        for kh in range(3):
            for kw in range(3):
                dd, dh_, dw_ = kd - 1, kh - 1, kw - 1
                m = (valid
                     & (dj + dd >= 0) & (dj + dd < d)
                     & (hj + dh_ >= 0) & (hj + dh_ < h)
                     & (wj + dw_ >= 0) & (wj + dw_ < w))
                mask_rows.append(m)
                starts.append(halo + dd * h * w + dh_ * w + dw_)   # Python int -> static
    masks = jnp.stack(mask_rows).astype(jnp.bfloat16)              # (27, DHW_pad)

    kernel = functools.partial(_fused_kernel, dhw=dhw, halo=halo, starts=tuple(starts),
                               cin=cin, k_pad=k_pad)
    out_flat = pl.pallas_call(
        kernel,
        out_shape=jax.ShapeDtypeStruct((n, cout_p, dhw_pad), jnp.float32),
        grid_spec=pltpu.PrefetchScalarGridSpec(
            num_scalar_prefetch=0,
            grid=(n,),
            in_specs=[
                pl.BlockSpec((1, cin, dhw_pad), lambda i: (i, 0, 0)),   # per-batch slab
                pl.BlockSpec((cout_p, k_pad), lambda i: (0, 0)),        # resident weights
                pl.BlockSpec((cout_p, 1), lambda i: (0, 0)),            # resident bias
                pl.BlockSpec((27, dhw_pad), lambda i: (0, 0)),          # resident tap masks
            ],
            out_specs=pl.BlockSpec((1, cout_p, dhw_pad), lambda i: (i, 0, 0)),
            scratch_shapes=[
                pltpu.VMEM((cin, dhw_pad + 2 * halo), jnp.bfloat16),    # halo'd activation
                pltpu.VMEM((k_pad, dhw_pad), jnp.bfloat16),             # stacked operand
            ],
        ),
        compiler_params=pltpu.CompilerParams(
            dimension_semantics=("parallel",),
            vmem_limit_bytes=_vmem_limit_bytes()),
    )(x_flat, w_mat, b_col, masks)

    # Channel / lane padding removal is a no-op slice at these shapes; reshape is free.
    out = out_flat[:, :cout, :dhw].reshape(n, cout, d, h, w)
    return out


# ---------------------------------------------------------------------------
# Pure-JAX reference (for correctness check)
# ---------------------------------------------------------------------------
def en_block_reference(x, weight, bias):
    mean = jnp.mean(x, axis=(2, 3, 4), keepdims=True)
    var = jnp.mean((x - mean) ** 2, axis=(2, 3, 4), keepdims=True)
    xn = (x - mean) * jax.lax.rsqrt(var + EPS)
    y = jnp.where(xn >= 0, xn, NEG_SLOPE * xn)
    out = jax.lax.conv_general_dilated(
        y, weight, window_strides=(1, 1, 1), padding=((1, 1), (1, 1), (1, 1)),
        dimension_numbers=("NCDHW", "OIDHW", "NCDHW"))
    return out + bias.reshape(1, -1, 1, 1, 1)


if __name__ == "__main__":
    key = jax.random.PRNGKey(0)
    k_x, k_w, k_b = jax.random.split(key, 3)

    N, C_IN, C_OUT, D, H, W = 2, 4, 8, 8, 8, 8
    x = jax.random.normal(k_x, (N, C_IN, D, H, W), dtype=jnp.float32)

    # Deterministic parameter init (synthetic; shapes match nn.Conv3d(in_ch, out_ch, 3)).
    fan_in = C_IN * 27
    bound = 1.0 / (fan_in ** 0.5)
    conv_w = jax.random.uniform(k_w, (C_OUT, C_IN, 3, 3, 3), jnp.float32, -bound, bound)
    conv_b = jax.random.uniform(k_b, (C_OUT,), jnp.float32, -bound, bound)

    fwd = jax.jit(en_block_forward)
    out = jax.block_until_ready(fwd(x, conv_w, conv_b))
    ref = jax.block_until_ready(en_block_reference(x, conv_w, conv_b))

    assert out.shape == (N, C_OUT, D, H, W), out.shape
    max_err = float(jnp.max(jnp.abs(out - ref)))
    # bf16 MXU operands with f32 accumulation -> loosened tolerance vs the f32 reference.
    assert jnp.allclose(out, ref, atol=5e-2, rtol=5e-2), max_err
    print("KERNEL_OK")
</pallas_src>

<mosaic_0001>
module attributes {stable_mosaic.version = 11 : i64} {
  func.func @_fused_kernel(%arg0: i32, %arg1: memref<1x4x512xf32, #tpu.memory_space<vmem>>, %arg2: memref<8x112xbf16, #tpu.memory_space<vmem>>, %arg3: memref<8x1xf32, #tpu.memory_space<vmem>>, %arg4: memref<27x512xbf16, #tpu.memory_space<vmem>>, %arg5: memref<1x8x512xf32, #tpu.memory_space<vmem>>, %arg6: memref<4x658xbf16, #tpu.memory_space<vmem>>, %arg7: memref<112x512xbf16, #tpu.memory_space<vmem>>) attributes {dimension_semantics = [#tpu.dimension_semantics<parallel>], iteration_bounds = array<i64: 2>, scalar_prefetch = 0 : i64, scratch_operands = 2 : i64, tpu.core_type = #tpu.core_type<tc>, window_params = [{transform_indices = @transform_0, window_bounds = array<i64: 1, 4, 512>}, {pipeline_mode = #tpu.pipeline_mode<synchronous>, transform_indices = @transform_1, window_bounds = array<i64: 8, 112>}, {pipeline_mode = #tpu.pipeline_mode<synchronous>, transform_indices = @transform_2, window_bounds = array<i64: 8, 1>}, {pipeline_mode = #tpu.pipeline_mode<synchronous>, transform_indices = @transform_3, window_bounds = array<i64: 27, 512>}, {transform_indices = @transform_4, window_bounds = array<i64: 1, 8, 512>}]} {
    %c0 = arith.constant 0 : index
    %c0_0 = arith.constant 0 : index
    %c0_1 = arith.constant 0 : index
    %0 = vector.load %arg1[%c0, %c0_0, %c0_1] : memref<1x4x512xf32, #tpu.memory_space<vmem>>, vector<1x4x512xf32>
    %1 = vector.shape_cast %0 : vector<1x4x512xf32> to vector<4x512xf32>
    %cst = arith.constant dense<0.000000e+00> : vector<4xf32>
    %2 = vector.multi_reduction <add>, %1, %cst [1] : vector<4x512xf32> to vector<4xf32>
    %3 = vector.shape_cast %2 : vector<4xf32> to vector<4x1xf32>
    %cst_2 = arith.constant 0.001953125 : f32
    %4 = vector.broadcast %cst_2 : f32 to vector<4x1xf32>
    %5 = arith.mulf %3, %4 : vector<4x1xf32>
    %6 = arith.mulf %1, %1 : vector<4x512xf32>
    %cst_3 = arith.constant dense<0.000000e+00> : vector<4xf32>
    %7 = vector.multi_reduction <add>, %6, %cst_3 [1] : vector<4x512xf32> to vector<4xf32>
    %8 = vector.shape_cast %7 : vector<4xf32> to vector<4x1xf32>
    %cst_4 = arith.constant 0.001953125 : f32
    %9 = vector.broadcast %cst_4 : f32 to vector<4x1xf32>
    %10 = arith.mulf %8, %9 : vector<4x1xf32>
    %11 = arith.mulf %5, %5 : vector<4x1xf32>
    %12 = arith.subf %10, %11 : vector<4x1xf32>
    %13 = vector.broadcast %5 : vector<4x1xf32> to vector<4x512xf32>
    %14 = arith.subf %1, %13 : vector<4x512xf32>
    %cst_5 = arith.constant 9.99999974E-6 : f32
    %15 = vector.broadcast %cst_5 : f32 to vector<4x1xf32>
    %16 = arith.addf %12, %15 : vector<4x1xf32>
    %17 = math.rsqrt %16 : vector<4x1xf32>
    %18 = vector.broadcast %17 : vector<4x1xf32> to vector<4x512xf32>
    %19 = arith.mulf %14, %18 : vector<4x512xf32>
    %cst_6 = arith.constant 0.000000e+00 : f32
    %20 = vector.broadcast %cst_6 : f32 to vector<4x512xf32>
    %21 = arith.cmpf oge, %19, %20 : vector<4x512xf32>
    %cst_7 = arith.constant 2.000000e-01 : f32
    %22 = vector.broadcast %cst_7 : f32 to vector<4x512xf32>
    %23 = arith.mulf %22, %19 : vector<4x512xf32>
    %24 = arith.select %21, %19, %23 : vector<4x512xi1>, vector<4x512xf32>
    %25 = arith.truncf %24 : vector<4x512xf32> to vector<4x512xbf16>
    %cst_8 = arith.constant 0.000000e+00 : bf16
    %26 = vector.broadcast %cst_8 : bf16 to vector<4x73xbf16>
    %c0_9 = arith.constant 0 : index
    %c0_10 = arith.constant 0 : index
    %27 = vector.load %arg6[%c0_9, %c0_10] : memref<4x658xbf16, #tpu.memory_space<vmem>>, vector<4x73xbf16>
    tpu.vector_store %arg6[%c0_9, %c0_10], %26 {strides = array<i32>} : memref<4x658xbf16, #tpu.memory_space<vmem>>, vector<4x73xbf16>,
    %cst_11 = arith.constant 0.000000e+00 : bf16
    %28 = vector.broadcast %cst_11 : bf16 to vector<4x73xbf16>
    %c0_12 = arith.constant 0 : index
    %c585 = arith.constant 585 : index
    %29 = vector.load %arg6[%c0_12, %c585] : memref<4x658xbf16, #tpu.memory_space<vmem>>, vector<4x73xbf16>
    tpu.vector_store %arg6[%c0_12, %c585], %28 {strides = array<i32>} : memref<4x658xbf16, #tpu.memory_space<vmem>>, vector<4x73xbf16>,
    %c0_13 = arith.constant 0 : index
    %c73 = arith.constant 73 : index
    %30 = vector.load %arg6[%c0_13, %c73] : memref<4x658xbf16, #tpu.memory_space<vmem>>, vector<4x512xbf16>
    tpu.vector_store %arg6[%c0_13, %c73], %25 {strides = array<i32>} : memref<4x658xbf16, #tpu.memory_space<vmem>>, vector<4x512xbf16>,
    %c0_14 = arith.constant 0 : index
    %c0_15 = arith.constant 0 : index
    %31 = vector.load %arg6[%c0_14, %c0_15] : memref<4x658xbf16, #tpu.memory_space<vmem>>, vector<4x512xbf16>
    %c0_16 = arith.constant 0 : index
    %c0_17 = arith.constant 0 : index
    %32 = vector.load %arg4[%c0_16, %c0_17] : memref<27x512xbf16, #tpu.memory_space<vmem>>, vector<1x512xbf16>
    %33 = vector.broadcast %32 : vector<1x512xbf16> to vector<4x512xbf16>
    %34 = arith.mulf %31, %33 : vector<4x512xbf16>
    %c0_18 = arith.constant 0 : index
    %c0_19 = arith.constant 0 : index
    %35 = vector.load %arg7[%c0_18, %c0_19] : memref<112x512xbf16, #tpu.memory_space<vmem>>, vector<4x512xbf16>
    tpu.vector_store %arg7[%c0_18, %c0_19], %34 {strides = array<i32>} : memref<112x512xbf16, #tpu.memory_space<vmem>>, vector<4x512xbf16>,
    %c0_20 = arith.constant 0 : index
    %c1 = arith.constant 1 : index
    %36 = vector.load %arg6[%c0_20, %c1] : memref<4x658xbf16, #tpu.memory_space<vmem>>, vector<4x512xbf16>
    %c1_21 = arith.constant 1 : index
    %c0_22 = arith.constant 0 : index
    %37 = vector.load %arg4[%c1_21, %c0_22] : memref<27x512xbf16, #tpu.memory_space<vmem>>, vector<1x512xbf16>
    %38 = vector.broadcast %37 : vector<1x512xbf16> to vector<4x512xbf16>
    %39 = arith.mulf %36, %38 : vector<4x512xbf16>
    %c4 = arith.constant 4 : index
    %c0_23 = arith.constant 0 : index
    %40 = vector.load %arg7[%c4, %c0_23] : memref<112x512xbf16, #tpu.memory_space<vmem>>, vector<4x512xbf16>
    tpu.vector_store %arg7[%c4, %c0_23], %39 {strides = array<i32>} : memref<112x512xbf16, #tpu.memory_space<vmem>>, vector<4x512xbf16>,
    %c0_24 = arith.constant 0 : index
    %c2 = arith.constant 2 : index
    %41 = vector.load %arg6[%c0_24, %c2] : memref<4x658xbf16, #tpu.memory_space<vmem>>, vector<4x512xbf16>
    %c2_25 = arith.constant 2 : index
    %c0_26 = arith.constant 0 : index
    %42 = vector.load %arg4[%c2_25, %c0_26] : memref<27x512xbf16, #tpu.memory_space<vmem>>, vector<1x512xbf16>
    %43 = vector.broadcast %42 : vector<1x512xbf16> to vector<4x512xbf16>
    %44 = arith.mulf %41, %43 : vector<4x512xbf16>
    %c8 = arith.constant 8 : index
    %c0_27 = arith.constant 0 : index
    %45 = vector.load %arg7[%c8, %c0_27] : memref<112x512xbf16, #tpu.memory_space<vmem>>, vector<4x512xbf16>
    tpu.vector_store %arg7[%c8, %c0_27], %44 {strides = array<i32>} : memref<112x512xbf16, #tpu.memory_space<vmem>>, vector<4x512xbf16>,
    %c0_28 = arith.constant 0 : index
    %c8_29 = arith.constant 8 : index
    %46 = vector.load %arg6[%c0_28, %c8_29] : memref<4x658xbf16, #tpu.memory_space<vmem>>, vector<4x512xbf16>
    %c3 = arith.constant 3 : index
    %c0_30 = arith.constant 0 : index
    %47 = vector.load %arg4[%c3, %c0_30] : memref<27x512xbf16, #tpu.memory_space<vmem>>, vector<1x512xbf16>
    %48 = vector.broadcast %47 : vector<1x512xbf16> to vector<4x512xbf16>
    %49 = arith.mulf %46, %48 : vector<4x512xbf16>
    %c12 = arith.constant 12 : index
    %c0_31 = arith.constant 0 : index
    %50 = vector.load %arg7[%c12, %c0_31] : memref<112x512xbf16, #tpu.memory_space<vmem>>, vector<4x512xbf16>
    tpu.vector_store %arg7[%c12, %c0_31], %49 {strides = array<i32>} : memref<112x512xbf16, #tpu.memory_space<vmem>>, vector<4x512xbf16>,
    %c0_32 = arith.constant 0 : index
    %c9 = arith.constant 9 : index
    %51 = vector.load %arg6[%c0_32, %c9] : memref<4x658xbf16, #tpu.memory_space<vmem>>, vector<4x512xbf16>
    %c4_33 = arith.constant 4 : index
    %c0_34 = arith.constant 0 : index
    %52 = vector.load %arg4[%c4_33, %c0_34] : memref<27x512xbf16, #tpu.memory_space<vmem>>, vector<1x512xbf16>
    %53 = vector.broadcast %52 : vector<1x512xbf16> to vector<4x512xbf16>
    %54 = arith.mulf %51, %53 : vector<4x512xbf16>
    %c16 = arith.constant 16 : index
    %c0_35 = arith.constant 0 : index
    %55 = vector.load %arg7[%c16, %c0_35] : memref<112x512xbf16, #tpu.memory_space<vmem>>, vector<4x512xbf16>
    tpu.vector_store %arg7[%c16, %c0_35], %54 {strides = array<i32>} : memref<112x512xbf16, #tpu.memory_space<vmem>>, vector<4x512xbf16>,
    %c0_36 = arith.constant 0 : index
    %c10 = arith.constant 10 : index
    %56 = vector.load %arg6[%c0_36, %c10] : memref<4x658xbf16, #tpu.memory_space<vmem>>, vector<4x512xbf16>
    %c5 = arith.constant 5 : index
    %c0_37 = arith.constant 0 : index
    %57 = vector.load %arg4[%c5, %c0_37] : memref<27x512xbf16, #tpu.memory_space<vmem>>, vector<1x512xbf16>
    %58 = vector.broadcast %57 : vector<1x512xbf16> to vector<4x512xbf16>
    %59 = arith.mulf %56, %58 : vector<4x512xbf16>
    %c20 = arith.constant 20 : index
    %c0_38 = arith.constant 0 : index
    %60 = vector.load %arg7[%c20, %c0_38] : memref<112x512xbf16, #tpu.memory_space<vmem>>, vector<4x512xbf16>
    tpu.vector_store %arg7[%c20, %c0_38], %59 {strides = array<i32>} : memref<112x512xbf16, #tpu.memory_space<vmem>>, vector<4x512xbf16>,
    %c0_39 = arith.constant 0 : index
    %c16_40 = arith.constant 16 : index
    %61 = vector.load %arg6[%c0_39, %c16_40] : memref<4x658xbf16, #tpu.memory_space<vmem>>, vector<4x512xbf16>
    %c6 = arith.constant 6 : index
    %c0_41 = arith.constant 0 : index
    %62 = vector.load %arg4[%c6, %c0_41] : memref<27x512xbf16, #tpu.memory_space<vmem>>, vector<1x512xbf16>
    %63 = vector.broadcast %62 : vector<1x512xbf16> to vector<4x512xbf16>
    %64 = arith.mulf %61, %63 : vector<4x512xbf16>
    %c24 = arith.constant 24 : index
    %c0_42 = arith.constant 0 : index
    %65 = vector.load %arg7[%c24, %c0_42] : memref<112x512xbf16, #tpu.memory_space<vmem>>, vector<4x512xbf16>
    tpu.vector_store %arg7[%c24, %c0_42], %64 {strides = array<i32>} : memref<112x512xbf16, #tpu.memory_space<vmem>>, vector<4x512xbf16>,
    %c0_43 = arith.constant 0 : index
    %c17 = arith.constant 17 : index
    %66 = vector.load %arg6[%c0_43, %c17] : memref<4x658xbf16, #tpu.memory_space<vmem>>, vector<4x512xbf16>
    %c7 = arith.constant 7 : index
    %c0_44 = arith.constant 0 : index
    %67 = vector.load %arg4[%c7, %c0_44] : memref<27x512xbf16, #tpu.memory_space<vmem>>, vector<1x512xbf16>
    %68 = vector.broadcast %67 : vector<1x512xbf16> to vector<4x512xbf16>
    %69 = arith.mulf %66, %68 : vector<4x512xbf16>
    %c28 = arith.constant 28 : index
    %c0_45 = arith.constant 0 : index
    %70 = vector.load %arg7[%c28, %c0_45] : memref<112x512xbf16, #tpu.memory_space<vmem>>, vector<4x512xbf16>
    tpu.vector_store %arg7[%c28, %c0_45], %69 {strides = array<i32>} : memref<112x512xbf16, #tpu.memory_space<vmem>>, vector<4x512xbf16>,
    %c0_46 = arith.constant 0 : index
    %c18 = arith.constant 18 : index
    %71 = vector.load %arg6[%c0_46, %c18] : memref<4x658xbf16, #tpu.memory_space<vmem>>, vector<4x512xbf16>
    %c8_47 = arith.constant 8 : index
    %c0_48 = arith.constant 0 : index
    %72 = vector.load %arg4[%c8_47, %c0_48] : memref<27x512xbf16, #tpu.memory_space<vmem>>, vector<1x512xbf16>
    %73 = vector.broadcast %72 : vector<1x512xbf16> to vector<4x512xbf16>
    %74 = arith.mulf %71, %73 : vector<4x512xbf16>
    %c32 = arith.constant 32 : index
    %c0_49 = arith.constant 0 : index
    %75 = vector.load %arg7[%c32, %c0_49] : memref<112x512xbf16, #tpu.memory_space<vmem>>, vector<4x512xbf16>
    tpu.vector_store %arg7[%c32, %c0_49], %74 {strides = array<i32>} : memref<112x512xbf16, #tpu.memory_space<vmem>>, vector<4x512xbf16>,
    %c0_50 = arith.constant 0 : index
    %c64 = arith.constant 64 : index
    %76 = vector.load %arg6[%c0_50, %c64] : memref<4x658xbf16, #tpu.memory_space<vmem>>, vector<4x512xbf16>
    %c9_51 = arith.constant 9 : index
    %c0_52 = arith.constant 0 : index
    %77 = vector.load %arg4[%c9_51, %c0_52] : memref<27x512xbf16, #tpu.memory_space<vmem>>, vector<1x512xbf16>
    %78 = vector.broadcast %77 : vector<1x512xbf16> to vector<4x512xbf16>
    %79 = arith.mulf %76, %78 : vector<4x512xbf16>
    %c36 = arith.constant 36 : index
    %c0_53 = arith.constant 0 : index
    %80 = vector.load %arg7[%c36, %c0_53] : memref<112x512xbf16, #tpu.memory_space<vmem>>, vector<4x512xbf16>
    tpu.vector_store %arg7[%c36, %c0_53], %79 {strides = array<i32>} : memref<112x512xbf16, #tpu.memory_space<vmem>>, vector<4x512xbf16>,
    %c0_54 = arith.constant 0 : index
    %c65 = arith.constant 65 : index
    %81 = vector.load %arg6[%c0_54, %c65] : memref<4x658xbf16, #tpu.memory_space<vmem>>, vector<4x512xbf16>
    %c10_55 = arith.constant 10 : index
    %c0_56 = arith.constant 0 : index
    %82 = vector.load %arg4[%c10_55, %c0_56] : memref<27x512xbf16, #tpu.memory_space<vmem>>, vector<1x512xbf16>
    %83 = vector.broadcast %82 : vector<1x512xbf16> to vector<4x512xbf16>
    %84 = arith.mulf %81, %83 : vector<4x512xbf16>
    %c40 = arith.constant 40 : index
    %c0_57 = arith.constant 0 : index
    %85 = vector.load %arg7[%c40, %c0_57] : memref<112x512xbf16, #tpu.memory_space<vmem>>, vector<4x512xbf16>
    tpu.vector_store %arg7[%c40, %c0_57], %84 {strides = array<i32>} : memref<112x512xbf16, #tpu.memory_space<vmem>>, vector<4x512xbf16>,
    %c0_58 = arith.constant 0 : index
    %c66 = arith.constant 66 : index
    %86 = vector.load %arg6[%c0_58, %c66] : memref<4x658xbf16, #tpu.memory_space<vmem>>, vector<4x512xbf16>
    %c11 = arith.constant 11 : index
    %c0_59 = arith.constant 0 : index
    %87 = vector.load %arg4[%c11, %c0_59] : memref<27x512xbf16, #tpu.memory_space<vmem>>, vector<1x512xbf16>
    %88 = vector.broadcast %87 : vector<1x512xbf16> to vector<4x512xbf16>
    %89 = arith.mulf %86, %88 : vector<4x512xbf16>
    %c44 = arith.constant 44 : index
    %c0_60 = arith.constant 0 : index
    %90 = vector.load %arg7[%c44, %c0_60] : memref<112x512xbf16, #tpu.memory_space<vmem>>, vector<4x512xbf16>
    tpu.vector_store %arg7[%c44, %c0_60], %89 {strides = array<i32>} : memref<112x512xbf16, #tpu.memory_space<vmem>>, vector<4x512xbf16>,
    %c0_61 = arith.constant 0 : index
    %c72 = arith.constant 72 : index
    %91 = vector.load %arg6[%c0_61, %c72] : memref<4x658xbf16, #tpu.memory_space<vmem>>, vector<4x512xbf16>
    %c12_62 = arith.constant 12 : index
    %c0_63 = arith.constant 0 : index
    %92 = vector.load %arg4[%c12_62, %c0_63] : memref<27x512xbf16, #tpu.memory_space<vmem>>, vector<1x512xbf16>
    %93 = vector.broadcast %92 : vector<1x512xbf16> to vector<4x512xbf16>
    %94 = arith.mulf %91, %93 : vector<4x512xbf16>
    %c48 = arith.constant 48 : index
    %c0_64 = arith.constant 0 : index
    %95 = vector.load %arg7[%c48, %c0_64] : memref<112x512xbf16, #tpu.memory_space<vmem>>, vector<4x512xbf16>
    tpu.vector_store %arg7[%c48, %c0_64], %94 {strides = array<i32>} : memref<112x512xbf16, #tpu.memory_space<vmem>>, vector<4x512xbf16>,
    %c0_65 = arith.constant 0 : index
    %c73_66 = arith.constant 73 : index
    %96 = vector.load %arg6[%c0_65, %c73_66] : memref<4x658xbf16, #tpu.memory_space<vmem>>, vector<4x512xbf16>
    %c13 = arith.constant 13 : index
    %c0_67 = arith.constant 0 : index
    %97 = vector.load %arg4[%c13, %c0_67] : memref<27x512xbf16, #tpu.memory_space<vmem>>, vector<1x512xbf16>
    %98 = vector.broadcast %97 : vector<1x512xbf16> to vector<4x512xbf16>
    %99 = arith.mulf %96, %98 : vector<4x512xbf16>
    %c52 = arith.constant 52 : index
    %c0_68 = arith.constant 0 : index
    %100 = vector.load %arg7[%c52, %c0_68] : memref<112x512xbf16, #tpu.memory_space<vmem>>, vector<4x512xbf16>
    tpu.vector_store %arg7[%c52, %c0_68], %99 {strides = array<i32>} : memref<112x512xbf16, #tpu.memory_space<vmem>>, vector<4x512xbf16>,
    %c0_69 = arith.constant 0 : index
    %c74 = arith.constant 74 : index
    %101 = vector.load %arg6[%c0_69, %c74] : memref<4x658xbf16, #tpu.memory_space<vmem>>, vector<4x512xbf16>
    %c14 = arith.constant 14 : index
    %c0_70 = arith.constant 0 : index
    %102 = vector.load %arg4[%c14, %c0_70] : memref<27x512xbf16, #tpu.memory_space<vmem>>, vector<1x512xbf16>
    %103 = vector.broadcast %102 : vector<1x512xbf16> to vector<4x512xbf16>
    %104 = arith.mulf %101, %103 : vector<4x512xbf16>
    %c56 = arith.constant 56 : index
    %c0_71 = arith.constant 0 : index
    %105 = vector.load %arg7[%c56, %c0_71] : memref<112x512xbf16, #tpu.memory_space<vmem>>, vector<4x512xbf16>
    tpu.vector_store %arg7[%c56, %c0_71], %104 {strides = array<i32>} : memref<112x512xbf16, #tpu.memory_space<vmem>>, vector<4x512xbf16>,
    %c0_72 = arith.constant 0 : index
    %c80 = arith.constant 80 : index
    %106 = vector.load %arg6[%c0_72, %c80] : memref<4x658xbf16, #tpu.memory_space<vmem>>, vector<4x512xbf16>
    %c15 = arith.constant 15 : index
    %c0_73 = arith.constant 0 : index
    %107 = vector.load %arg4[%c15, %c0_73] : memref<27x512xbf16, #tpu.memory_space<vmem>>, vector<1x512xbf16>
    %108 = vector.broadcast %107 : vector<1x512xbf16> to vector<4x512xbf16>
    %109 = arith.mulf %106, %108 : vector<4x512xbf16>
    %c60 = arith.constant 60 : index
    %c0_74 = arith.constant 0 : index
    %110 = vector.load %arg7[%c60, %c0_74] : memref<112x512xbf16, #tpu.memory_space<vmem>>, vector<4x512xbf16>
    tpu.vector_store %arg7[%c60, %c0_74], %109 {strides = array<i32>} : memref<112x512xbf16, #tpu.memory_space<vmem>>, vector<4x512xbf16>,
    %c0_75 = arith.constant 0 : index
    %c81 = arith.constant 81 : index
    %111 = vector.load %arg6[%c0_75, %c81] : memref<4x658xbf16, #tpu.memory_space<vmem>>, vector<4x512xbf16>
    %c16_76 = arith.constant 16 : index
    %c0_77 = arith.constant 0 : index
    %112 = vector.load %arg4[%c16_76, %c0_77] : memref<27x512xbf16, #tpu.memory_space<vmem>>, vector<1x512xbf16>
    %113 = vector.broadcast %112 : vector<1x512xbf16> to vector<4x512xbf16>
    %114 = arith.mulf %111, %113 : vector<4x512xbf16>
    %c64_78 = arith.constant 64 : index
    %c0_79 = arith.constant 0 : index
    %115 = vector.load %arg7[%c64_78, %c0_79] : memref<112x512xbf16, #tpu.memory_space<vmem>>, vector<4x512xbf16>
    tpu.vector_store %arg7[%c64_78, %c0_79], %114 {strides = array<i32>} : memref<112x512xbf16, #tpu.memory_space<vmem>>, vector<4x512xbf16>,
    %c0_80 = arith.constant 0 : index
    %c82 = arith.constant 82 : index
    %116 = vector.load %arg6[%c0_80, %c82] : memref<4x658xbf16, #tpu.memory_space<vmem>>, vector<4x512xbf16>
    %c17_81 = arith.constant 17 : index
    %c0_82 = arith.constant 0 : index
    %117 = vector.load %arg4[%c17_81, %c0_82] : memref<27x512xbf16, #tpu.memory_space<vmem>>, vector<1x512xbf16>
    %118 = vector.broadcast %117 : vector<1x512xbf16> to vector<4x512xbf16>
    %119 = arith.mulf %116, %118 : vector<4x512xbf16>
    %c68 = arith.constant 68 : index
    %c0_83 = arith.constant 0 : index
    %120 = vector.load %arg7[%c68, %c0_83] : memref<112x512xbf16, #tpu.memory_space<vmem>>, vector<4x512xbf16>
    tpu.vector_store %arg7[%c68, %c0_83], %119 {strides = array<i32>} : memref<112x512xbf16, #tpu.memory_space<vmem>>, vector<4x512xbf16>,
    %c0_84 = arith.constant 0 : index
    %c128 = arith.constant 128 : index
    %121 = vector.load %arg6[%c0_84, %c128] : memref<4x658xbf16, #tpu.memory_space<vmem>>, vector<4x512xbf16>
    %c18_85 = arith.constant 18 : index
    %c0_86 = arith.constant 0 : index
    %122 = vector.load %arg4[%c18_85, %c0_86] : memref<27x512xbf16, #tpu.memory_space<vmem>>, vector<1x512xbf16>
    %123 = vector.broadcast %122 : vector<1x512xbf16> to vector<4x512xbf16>
    %124 = arith.mulf %121, %123 : vector<4x512xbf16>
    %c72_87 = arith.constant 72 : index
    %c0_88 = arith.constant 0 : index
    %125 = vector.load %arg7[%c72_87, %c0_88] : memref<112x512xbf16, #tpu.memory_space<vmem>>, vector<4x512xbf16>
    tpu.vector_store %arg7[%c72_87, %c0_88], %124 {strides = array<i32>} : memref<112x512xbf16, #tpu.memory_space<vmem>>, vector<4x512xbf16>,
    %c0_89 = arith.constant 0 : index
    %c129 = arith.constant 129 : index
    %126 = vector.load %arg6[%c0_89, %c129] : memref<4x658xbf16, #tpu.memory_space<vmem>>, vector<4x512xbf16>
    %c19 = arith.constant 19 : index
    %c0_90 = arith.constant 0 : index
    %127 = vector.load %arg4[%c19, %c0_90] : memref<27x512xbf16, #tpu.memory_space<vmem>>, vector<1x512xbf16>
    %128 = vector.broadcast %127 : vector<1x512xbf16> to vector<4x512xbf16>
    %129 = arith.mulf %126, %128 : vector<4x512xbf16>
    %c76 = arith.constant 76 : index
    %c0_91 = arith.constant 0 : index
    %130 = vector.load %arg7[%c76, %c0_91] : memref<112x512xbf16, #tpu.memory_space<vmem>>, vector<4x512xbf16>
    tpu.vector_store %arg7[%c76, %c0_91], %129 {strides = array<i32>} : memref<112x512xbf16, #tpu.memory_space<vmem>>, vector<4x512xbf16>,
    %c0_92 = arith.constant 0 : index
    %c130 = arith.constant 130 : index
    %131 = vector.load %arg6[%c0_92, %c130] : memref<4x658xbf16, #tpu.memory_space<vmem>>, vector<4x512xbf16>
    %c20_93 = arith.constant 20 : index
    %c0_94 = arith.constant 0 : index
    %132 = vector.load %arg4[%c20_93, %c0_94] : memref<27x512xbf16, #tpu.memory_space<vmem>>, vector<1x512xbf16>
    %133 = vector.broadcast %132 : vector<1x512xbf16> to vector<4x512xbf16>
    %134 = arith.mulf %131, %133 : vector<4x512xbf16>
    %c80_95 = arith.constant 80 : index
    %c0_96 = arith.constant 0 : index
    %135 = vector.load %arg7[%c80_95, %c0_96] : memref<112x512xbf16, #tpu.memory_space<vmem>>, vector<4x512xbf16>
    tpu.vector_store %arg7[%c80_95, %c0_96], %134 {strides = array<i32>} : memref<112x512xbf16, #tpu.memory_space<vmem>>, vector<4x512xbf16>,
    %c0_97 = arith.constant 0 : index
    %c136 = arith.constant 136 : index
    %136 = vector.load %arg6[%c0_97, %c136] : memref<4x658xbf16, #tpu.memory_space<vmem>>, vector<4x512xbf16>
    %c21 = arith.constant 21 : index
    %c0_98 = arith.constant 0 : index
    %137 = vector.load %arg4[%c21, %c0_98] : memref<27x512xbf16, #tpu.memory_space<vmem>>, vector<1x512xbf16>
    %138 = vector.broadcast %137 : vector<1x512xbf16> to vector<4x512xbf16>
    %139 = arith.mulf %136, %138 : vector<4x512xbf16>
    %c84 = arith.constant 84 : index
    %c0_99 = arith.constant 0 : index
    %140 = vector.load %arg7[%c84, %c0_99] : memref<112x512xbf16, #tpu.memory_space<vmem>>, vector<4x512xbf16>
    tpu.vector_store %arg7[%c84, %c0_99], %139 {strides = array<i32>} : memref<112x512xbf16, #tpu.memory_space<vmem>>, vector<4x512xbf16>,
    %c0_100 = arith.constant 0 : index
    %c137 = arith.constant 137 : index
    %141 = vector.load %arg6[%c0_100, %c137] : memref<4x658xbf16, #tpu.memory_space<vmem>>, vector<4x512xbf16>
    %c22 = arith.constant 22 : index
    %c0_101 = arith.constant 0 : index
    %142 = vector.load %arg4[%c22, %c0_101] : memref<27x512xbf16, #tpu.memory_space<vmem>>, vector<1x512xbf16>
    %143 = vector.broadcast %142 : vector<1x512xbf16> to vector<4x512xbf16>
    %144 = arith.mulf %141, %143 : vector<4x512xbf16>
    %c88 = arith.constant 88 : index
    %c0_102 = arith.constant 0 : index
    %145 = vector.load %arg7[%c88, %c0_102] : memref<112x512xbf16, #tpu.memory_space<vmem>>, vector<4x512xbf16>
    tpu.vector_store %arg7[%c88, %c0_102], %144 {strides = array<i32>} : memref<112x512xbf16, #tpu.memory_space<vmem>>, vector<4x512xbf16>,
    %c0_103 = arith.constant 0 : index
    %c138 = arith.constant 138 : index
    %146 = vector.load %arg6[%c0_103, %c138] : memref<4x658xbf16, #tpu.memory_space<vmem>>, vector<4x512xbf16>
    %c23 = arith.constant 23 : index
    %c0_104 = arith.constant 0 : index
    %147 = vector.load %arg4[%c23, %c0_104] : memref<27x512xbf16, #tpu.memory_space<vmem>>, vector<1x512xbf16>
    %148 = vector.broadcast %147 : vector<1x512xbf16> to vector<4x512xbf16>
    %149 = arith.mulf %146, %148 : vector<4x512xbf16>
    %c92 = arith.constant 92 : index
    %c0_105 = arith.constant 0 : index
    %150 = vector.load %arg7[%c92, %c0_105] : memref<112x512xbf16, #tpu.memory_space<vmem>>, vector<4x512xbf16>
    tpu.vector_store %arg7[%c92, %c0_105], %149 {strides = array<i32>} : memref<112x512xbf16, #tpu.memory_space<vmem>>, vector<4x512xbf16>,
    %c0_106 = arith.constant 0 : index
    %c144 = arith.constant 144 : index
    %151 = vector.load %arg6[%c0_106, %c144] : memref<4x658xbf16, #tpu.memory_space<vmem>>, vector<4x512xbf16>
    %c24_107 = arith.constant 24 : index
    %c0_108 = arith.constant 0 : index
    %152 = vector.load %arg4[%c24_107, %c0_108] : memref<27x512xbf16, #tpu.memory_space<vmem>>, vector<1x512xbf16>
    %153 = vector.broadcast %152 : vector<1x512xbf16> to vector<4x512xbf16>
    %154 = arith.mulf %151, %153 : vector<4x512xbf16>
    %c96 = arith.constant 96 : index
    %c0_109 = arith.constant 0 : index
    %155 = vector.load %arg7[%c96, %c0_109] : memref<112x512xbf16, #tpu.memory_space<vmem>>, vector<4x512xbf16>
    tpu.vector_store %arg7[%c96, %c0_109], %154 {strides = array<i32>} : memref<112x512xbf16, #tpu.memory_space<vmem>>, vector<4x512xbf16>,
    %c0_110 = arith.constant 0 : index
    %c145 = arith.constant 145 : index
    %156 = vector.load %arg6[%c0_110, %c145] : memref<4x658xbf16, #tpu.memory_space<vmem>>, vector<4x512xbf16>
    %c25 = arith.constant 25 : index
    %c0_111 = arith.constant 0 : index
    %157 = vector.load %arg4[%c25, %c0_111] : memref<27x512xbf16, #tpu.memory_space<vmem>>, vector<1x512xbf16>
    %158 = vector.broadcast %157 : vector<1x512xbf16> to vector<4x512xbf16>
    %159 = arith.mulf %156, %158 : vector<4x512xbf16>
    %c100 = arith.constant 100 : index
    %c0_112 = arith.constant 0 : index
    %160 = vector.load %arg7[%c100, %c0_112] : memref<112x512xbf16, #tpu.memory_space<vmem>>, vector<4x512xbf16>
    tpu.vector_store %arg7[%c100, %c0_112], %159 {strides = array<i32>} : memref<112x512xbf16, #tpu.memory_space<vmem>>, vector<4x512xbf16>,
    %c0_113 = arith.constant 0 : index
    %c146 = arith.constant 146 : index
    %161 = vector.load %arg6[%c0_113, %c146] : memref<4x658xbf16, #tpu.memory_space<vmem>>, vector<4x512xbf16>
    %c26 = arith.constant 26 : index
    %c0_114 = arith.constant 0 : index
    %162 = vector.load %arg4[%c26, %c0_114] : memref<27x512xbf16, #tpu.memory_space<vmem>>, vector<1x512xbf16>
    %163 = vector.broadcast %162 : vector<1x512xbf16> to vector<4x512xbf16>
    %164 = arith.mulf %161, %163 : vector<4x512xbf16>
    %c104 = arith.constant 104 : index
    %c0_115 = arith.constant 0 : index
    %165 = vector.load %arg7[%c104, %c0_115] : memref<112x512xbf16, #tpu.memory_space<vmem>>, vector<4x512xbf16>
    tpu.vector_store %arg7[%c104, %c0_115], %164 {strides = array<i32>} : memref<112x512xbf16, #tpu.memory_space<vmem>>, vector<4x512xbf16>,
    %cst_116 = arith.constant 0.000000e+00 : bf16
    %166 = vector.broadcast %cst_116 : bf16 to vector<4x512xbf16>
    %c108 = arith.constant 108 : index
    %c0_117 = arith.constant 0 : index
    %167 = vector.load %arg7[%c108, %c0_117] : memref<112x512xbf16, #tpu.memory_space<vmem>>, vector<4x512xbf16>
    tpu.vector_store %arg7[%c108, %c0_117], %166 {strides = array<i32>} : memref<112x512xbf16, #tpu.memory_space<vmem>>, vector<4x512xbf16>,
    %c0_118 = arith.constant 0 : index
    %c0_119 = arith.constant 0 : index
    %168 = vector.load %arg2[%c0_118, %c0_119] : memref<8x112xbf16, #tpu.memory_space<vmem>>, vector<8x112xbf16>
    %c0_120 = arith.constant 0 : index
    %c0_121 = arith.constant 0 : index
    %169 = vector.load %arg7[%c0_120, %c0_121] : memref<112x512xbf16, #tpu.memory_space<vmem>>, vector<112x512xbf16>
    %cst_122 = arith.constant dense<0.000000e+00> : vector<8x512xf32>
    %170 = tpu.matmul %168, %169, %cst_122 {dimension_numbers = #tpu.dot_dimension_numbers<[1], [0], [0], [1], [0, 0, 1, 1], [], []>} : vector<8x112xbf16>, vector<112x512xbf16>, vector<8x512xf32> -> vector<8x512xf32>
    %c0_123 = arith.constant 0 : index
    %c0_124 = arith.constant 0 : index
    %171 = vector.load %arg3[%c0_123, %c0_124] : memref<8x1xf32, #tpu.memory_space<vmem>>, vector<8x1xf32>
    %172 = vector.broadcast %171 : vector<8x1xf32> to vector<8x512xf32>
    %173 = arith.addf %170, %172 : vector<8x512xf32>
    %c0_125 = arith.constant 0 : index
    %c0_126 = arith.constant 0 : index
    %c0_127 = arith.constant 0 : index
    %174 = vector.load %arg5[%c0_125, %c0_126, %c0_127] : memref<1x8x512xf32, #tpu.memory_space<vmem>>, vector<1x8x512xf32>
    %175 = vector.shape_cast %174 : vector<1x8x512xf32> to vector<8x512xf32>
    %176 = vector.shape_cast %173 : vector<8x512xf32> to vector<1x8x512xf32>
    tpu.vector_store %arg5[%c0_125, %c0_126, %c0_127], %176 {strides = array<i32>} : memref<1x8x512xf32, #tpu.memory_space<vmem>>, vector<1x8x512xf32>,
    return
  }
  func.func @transform_0(%arg0: i32) -> (i32, i32, i32) {
    %c0_i32 = arith.constant 0 : i32
    %c0_i32_0 = arith.constant 0 : i32
    %c0_i32_1 = arith.constant 0 : i32
    return %arg0, %c0_i32, %c0_i32_0 : i32, i32, i32
  }
  func.func @transform_1(%arg0: i32) -> (i32, i32) {
    %c0_i32 = arith.constant 0 : i32
    %c0_i32_0 = arith.constant 0 : i32
    %c0_i32_1 = arith.constant 0 : i32
    return %c0_i32, %c0_i32_0 : i32, i32
  }
  func.func @transform_2(%arg0: i32) -> (i32, i32) {
    %c0_i32 = arith.constant 0 : i32
    %c0_i32_0 = arith.constant 0 : i32
    %c0_i32_1 = arith.constant 0 : i32
    return %c0_i32, %c0_i32_0 : i32, i32
  }
  func.func @transform_3(%arg0: i32) -> (i32, i32) {
    %c0_i32 = arith.constant 0 : i32
    %c0_i32_0 = arith.constant 0 : i32
    %c0_i32_1 = arith.constant 0 : i32
    return %c0_i32, %c0_i32_0 : i32, i32
  }
  func.func @transform_4(%arg0: i32) -> (i32, i32, i32) {
    %c0_i32 = arith.constant 0 : i32
    %c0_i32_0 = arith.constant 0 : i32
    %c0_i32_1 = arith.constant 0 : i32
    return %arg0, %c0_i32, %c0_i32_0 : i32, i32, i32
  }
}

</mosaic_0001>

<bundles_post_ra>
// kernel: en_block_forward.1
= control target key start
LH: loop header
LB: loop body
LE: loop exit
PB: predicated region body
PF: predicated region fallthrough
CT: control target
= control target key end

     0   :  { %s4134_s15 = smov 0   ;;  %s5338_s0 = inlined_call_operand.vmem [shape: f32[2,4,512], index: 0, kind: input, shape index: {}]   ;;  %s5339_s1 = inlined_call_operand.vmem [shape: bf16[8,112], index: 1, kind: input, shape index: {}]   ;;  %s5340_s2 = inlined_call_operand.vmem [shape: f32[8,1], index: 2, kind: input, shape index: {}]   ;;  %s5341_s3 = inlined_call_operand.vmem [shape: bf16[27,512], index: 3, kind: input, shape index: {}]   ;;  %s5342_s4 = inlined_call_operand.vmem [shape: f32[2,8,512], index: 4, kind: output, shape index: {}]  }
   0x1 LB: > { %s3708_s16 = sadd.s32 4294967295, %s4071_s15   ;;  %p3712_p0 = scmp.ge.s32.totalorder %s4071_s15, 1  ;;  %s4071_s15 = sphi %s4134_s15, %s14_s15  }
   0x2   : > { %p162_p1 = scmp.lt.s32.totalorder %s4071_s15, 3 }
   0x4   : > { %p163_p2 = pnand %p3712_p0, %p162_p1 }
   0x5   : > { %p188_p3 = scmp.lt.s32.totalorder (!%p163_p2), %s3708_s16, 1  ;;  %s4074_s11 = smov (!%p163_p2), 16  }
   0x6   : > { %166 = sbr.rel (%p163_p2) target bundleno = 795 (0x31b), region = 36  ;;  %s4075_s18 = smov (!%p163_p2), 18  }
   0x7   : > { %s4076_s23 = smov (!%p163_p2), 2   ;;  %s4077_s29 = smov (!%p163_p2), 8  }
   0x8   : > { %s4078_s8 = smov (!%p163_p2), 9   ;;  %s4079_s19 = smov (!%p163_p2), 10  }
   0x9   : > { %s4080_s22 = smov (!%p163_p2), 81   ;;  %s4081_s30 = smov (!%p163_p2), 1  }
   0xa   : > { %s4082_s10 = smov (!%p163_p2), 17   ;;  %s4083_s20 = smov (!%p163_p2), 73  }
   0xb   : > { %v242_v0 = vlaneseq  ;;  %vm207_vm0 = vcmask 1043456   ;;  %v4073_v1 = vmov 1983009808   ;;  %v3047_v3 = vld [vmem:[%s5341_s3 + $0x30] sm:$0x11]  ;;  %s5344_s16 = smov (!%p188_p3, %s3708_s16), 1 }
   0xc   : > { %v291_v2 = vunpack.c.l.s4 %v4073_v1  ;;  %v3048_v4 = vld [vmem:[%s5341_s3 + $0x38] sm:$0x11]  ;;  %v3819_v6 = vcombine.low %v3047_v3, %v3047_v3  ;;  %v3820_v7 = vcombine.high %v3047_v3, %v3047_v3  ;;  %v3276_v9 = vld [vmem:[%s5341_s3 + $0x30] sm:$0x22]  ;;  %v3277_v10 = vld [vmem:[%s5341_s3 + $0x38] sm:$0x22] }
   0xd   : > { %v4150_v5 = vshrl.u32 %v242_v0, 7  ;;  %v3821_v8 = vcombine.low %v3048_v4, %v3048_v4  ;;  %v3822_v12 = vcombine.high %v3048_v4, %v3048_v4  ;;  %v3827_v13 = vcombine.low %v3276_v9, %v3276_v9  ;;  %s3863_s25 = sshll.u32 %s5344_s16, 4  ;;  %v2589_v49 = vld [vmem:[%s5341_s3 + $0x20] sm:$0x44]  ;;  %v2590_v58 = vld [vmem:[%s5341_s3 + $0x28] sm:$0x44] }
   0xe   : > { %v292_v11 = vunpack.c.0.s8 %v291_v2  ;;  %v3828_v14 = vcombine.high %v3276_v9, %v3276_v9  ;;  %v3060_v16 = vpack.i.b16 %v3819_v6, %v3819_v6  ;;  %v3067_v17 = vpack.i.b16 %v3820_v7, %v3820_v7  ;;  %s4165_s28 = scalar_lea.vmem %s5338_s0, %s3863_s25  ;;  %v2701_v63 = vld [vmem:[%s5341_s3 + $0x20] sm:$0x44]  ;;  %v2702_v9 = vld [vmem:[%s5341_s3 + $0x28] sm:$0x44]  ;;  %s4084_s5 = smov 82  }
   0xf   : > { %v4160_v15 = vsub.s32 0, %v4150_v5  ;;  %v3074_v18 = vpack.i.b16 %v3821_v8, %v3821_v8  ;;  %v3081_v20 = vpack.i.b16 %v3822_v12, %v3822_v12  ;;  %v4171_v21 = vsub.s32 1, %v4150_v5  ;;  %v199_v23 = vld [vmem:[%s4165_s28] sm:$0xff]  ;;  %v200_v24 = vld [vmem:[%s4165_s28 + $0x8] sm:$0xff]  ;;  %s4085_s9 = smov 80   ;;  %s4086_s21 = smov 72  }
  0x10   : > { %v4168_v19 = vsub.s32 %v292_v11, %v4150_v5  ;;  %v3829_v22 = vcombine.low %v3277_v10, %v3277_v10  ;;  %v3830_v28 = vcombine.high %v3277_v10, %v3277_v10  ;;  %v203_v29 = vcombine.high %v199_v23, %v199_v23  ;;  %s4087_s27 = smov 64   ;;  %s4088_s7 = smov 74  }
  0x11   : > { %v3065_v25 = vrot.slane %v3060_v16, %v4160_v15  ;;  %v3072_v26 = vrot.slane %v3067_v17, %v4160_v15  ;;  %v3079_v27 = vrot.slane %v3074_v18, %v4160_v15  ;;  %v204_v30 = vcombine.high %v200_v24, %v200_v24  ;;  %s4096_s12 = smov 119   ;;  %s4098_s13 = smov 118  }
  0x12   : > { %v208_v31 = vsel %vm207_vm0, %v199_v23, 0.0  ;;  %v211_v32 = vsel %vm207_vm0, %v200_v24, 0.0  ;;  %v218_v33 = vmul.f32 %v199_v23, %v199_v23  ;;  %v219_v34 = vmul.f32 %v200_v24, %v200_v24  ;;  %s4101_s26 = smov 47   ;;  %s4103_s6 = smov 54  }
  0x13   : > { %v3086_v35 = vrot.slane %v3081_v20, %v4160_v15  ;;  %v3091_v36 = vcombine.low %v3065_v25, %v3072_v26  ;;  %v209_v37 = vsel %vm207_vm0, %v203_v29, 0.0  ;;  %v213_v38 = vsel %vm207_vm0, %v204_v30, 0.0  ;;  %v2818_v29 = vld [vmem:[%s5341_s3 + $0x20] sm:$0x88]  ;;  %s4108_s14 = smov 62  }
  0x14   : > { %v3289_v39 = vpack.i.b16 %v3827_v13, %v3827_v13  ;;  %v3296_v40 = vpack.i.b16 %v3828_v14, %v3828_v14  ;;  %v210_v41 = vadd.f32 %v209_v37, %v208_v31  ;;  %v222_v42 = vcombine.high %v218_v33, %v218_v33 }
  0x15   : > { %v223_v43 = vcombine.high %v219_v34, %v219_v34  ;;  %v226_v44 = vsel %vm207_vm0, %v218_v33, 0.0  ;;  %v229_v45 = vsel %vm207_vm0, %v219_v34, 0.0  ;;  %v3092_v46 = vcombine.low %v3079_v27, %v3086_v35 }
  0x16   : > { %v3099_v47 = vrot.slane %v3091_v36, %v4168_v19  ;;  %v3294_v48 = vrot.slane %v3289_v39, %v4171_v21  ;;  %v212_v50 = vadd.f32 %v211_v32, %v210_v41  ;;  %v227_v51 = vsel %vm207_vm0, %v222_v42, 0.0 }
  0x17   : > { %v231_v52 = vsel %vm207_vm0, %v223_v43, 0.0  ;;  %v3301_v53 = vrot.slane %v3296_v40, %v4171_v21  ;;  %v228_v54 = vadd.f32 %v227_v51, %v226_v44  ;;  %v3106_v55 = vrot.slane %v3092_v46, %v4168_v19 }
  0x18   : > { %v3303_v56 = vpack.i.b16 %v3829_v22, %v3829_v22  ;;  %v3310_v57 = vpack.i.b16 %v3830_v28, %v3830_v28  ;;  %v214_v59 = vadd.f32 %v213_v38, %v212_v50  ;;  %v4198_v61 = vsub.s32 2, %v4150_v5  ;;  %v2819_v38 = vld [vmem:[%s5341_s3 + $0x28] sm:$0x88] }
  0x19   : > { %v3320_v60 = vcombine.low %v3294_v48, %v3301_v53  ;;  %v3803_v62 = vcombine.low %v2589_v49, %v2589_v49  ;;  %v230_v0 = vadd.f32 %v229_v45, %v228_v54  ;;  %v3107_v1 = vcombine.low %v3099_v47, %v3106_v55  ;;  %v2930_v47 = vld [vmem:[%s5341_s3 + $0x20] sm:$0x88] }
  0x1a   : > { %v3308_v2 = vrot.slane %v3303_v56, %v4171_v21  ;;  %v3315_v3 = vrot.slane %v3310_v57, %v4171_v21  ;;  %215 = vadd.xlane.f32.xlu0 %v214_v59  ;;  %v3804_v6 = vcombine.high %v2589_v49, %v2589_v49  ;;  %v3805_v7 = vcombine.low %v2590_v58, %v2590_v58  ;;  %v2931_v56 = vld [vmem:[%s5341_s3 + $0x28] sm:$0x88] }
  0x1b   : > { %v3328_v4 = vrot.slane %v3320_v60, %v4168_v19  ;;  %v3806_v8 = vcombine.high %v2590_v58, %v2590_v58  ;;  %v232_v10 = vadd.f32 %v231_v52, %v230_v0  ;;  %3108 = vrot.lane.b32.xlu1 %v3107_v1, %s4074_s11  ;;  %v2602_v12 = vpack.i.b16 %v3803_v62, %v3803_v62 }
  0x1c   : > { %v3321_v11 = vcombine.low %v3308_v2, %v3315_v3  ;;  %v3807_v13 = vcombine.low %v2701_v63, %v2701_v63  ;;  %v2609_v14 = vpack.i.b16 %v3804_v6, %v3804_v6  ;;  %v2616_v16 = vpack.i.b16 %v3805_v7, %v3805_v7  ;;  %v2155_v2 = vld [vmem:[%s5341_s3 + $0x20] sm:$0x11] }
  0x1d   : > { %v2623_v17 = vpack.i.b16 %v3806_v8, %v3806_v8  ;;  %v3808_v18 = vcombine.high %v2701_v63, %v2701_v63  ;;  %v2607_v22 = vrot.slane %v2602_v12, %v4198_v61  ;;  %v3809_v23 = vcombine.low %v2702_v9, %v2702_v9  ;;  %v2156_v12 = vld [vmem:[%s5341_s3 + $0x28] sm:$0x11] }
  0x1e   : > { %v3335_v20 = vrot.slane %v3321_v11, %v4168_v19  ;;  %v3810_v24 = vcombine.high %v2702_v9, %v2702_v9  ;;  %233 = vadd.xlane.f32.xlu0 %v232_v10  ;;  %v2614_v25 = vrot.slane %v2609_v14, %v4198_v61  ;;  %v2621_v26 = vrot.slane %v2616_v16, %v4198_v61 }
  0x1f   : > { %v2628_v27 = vrot.slane %v2623_v17, %v4198_v61  ;;  %v2714_v28 = vshrl.u32 %v3807_v13, 16  ;;  %v2722_v31 = vshrl.u32 %v3808_v18, 16  ;;  %v2730_v32 = vshrl.u32 %v3809_v23, 16 }
  0x20   : > { %v3336_v30 = vcombine.low %v3328_v4, %v3335_v20  ;;  %v2738_v33 = vshrl.u32 %v3810_v24, 16  ;;  %v2633_v34 = vcombine.low %v2607_v22, %v2614_v25  ;;  %v4219_v37 = vsub.s32 3, %v4150_v5 }
  0x21   : > { %v2634_v35 = vcombine.low %v2621_v26, %v2628_v27  ;;  %v2715_v36 = vpack.i.b16 %v2714_v28, %v2714_v28  ;;  %v2723_v39 = vpack.i.b16 %v2722_v31, %v2722_v31  ;;  %v2731_v40 = vpack.i.b16 %v2730_v32, %v2730_v32  ;;  %v2472_v32 = vld [vmem:[%s5341_s3 + $0x20] sm:$0x22] }
  0x22   : > { %3337 = vrot.lane.b32.xlu1 %v3336_v30, %s4075_s18  ;;  %v2739_v41 = vpack.i.b16 %v2738_v33, %v2738_v33  ;;  %v3811_v42 = vcombine.low %v2818_v29, %v2818_v29  ;;  %v2641_v43 = vrot.slane %v2633_v34, %v4168_v19  ;;  %v3812_v46 = vcombine.high %v2818_v29, %v2818_v29 }
  0x23   : > { %v2648_v44 = vrot.slane %v2634_v35, %v4168_v19  ;;  %v2720_v45 = vrot.slane %v2715_v36, %v4198_v61  ;;  %v2728_v48 = vrot.slane %v2723_v39, %v4198_v61  ;;  %v2736_v49 = vrot.slane %v2731_v40, %v4198_v61 }
  0x24   : > { %v2744_v50 = vrot.slane %v2739_v41, %v4198_v61  ;;  %v3813_v51 = vcombine.low %v2819_v38, %v2819_v38  ;;  %v3814_v53 = vcombine.high %v2819_v38, %v2819_v38  ;;  %v2831_v54 = vpack.i.b16 %v3811_v42, %v3811_v42  ;;  %v2473_v42 = vld [vmem:[%s5341_s3 + $0x28] sm:$0x22] }
  0x25   : > { %v2649_v52 = vcombine.low %v2641_v43, %v2648_v44  ;;  %v2838_v55 = vpack.i.b16 %v3812_v46, %v3812_v46  ;;  %v2749_v57 = vcombine.low %v2720_v45, %v2728_v48  ;;  %v3815_v60 = vcombine.low %v2930_v47, %v2930_v47 }
  0x26   : > { %v2750_v58 = vcombine.low %v2736_v49, %v2744_v50  ;;  %v2845_v59 = vpack.i.b16 %v3813_v51, %v3813_v51  ;;  %v2836_v62 = vrot.slane %v2831_v54, %v4219_v37  ;;  %v2852_v0 = vpack.i.b16 %v3814_v53, %v3814_v53  ;;  %v3159_v51 = vld [vmem:[%s5341_s3 + $0x30] sm:$0x11] }
  0x27   : > { %2650 = vrot.lane.b32.xlu1 %v2649_v52, %s4076_s23  ;;  %v2843_v63 = vrot.slane %v2838_v55, %v4219_v37  ;;  %v3816_v1 = vcombine.high %v2930_v47, %v2930_v47  ;;  %v2757_v3 = vrot.slane %v2749_v57, %v4168_v19  ;;  %v3817_v7 = vcombine.low %v2931_v56, %v2931_v56 }
  0x28   : > { %v2764_v4 = vrot.slane %v2750_v58, %v4168_v19  ;;  %v2850_v6 = vrot.slane %v2845_v59, %v4219_v37  ;;  %v2857_v8 = vrot.slane %v2852_v0, %v4219_v37  ;;  %v3818_v10 = vcombine.high %v2931_v56, %v2931_v56 }
  0x29   : > { %v2862_v9 = vcombine.low %v2836_v62, %v2843_v63  ;;  %v2943_v11 = vshrl.u32 %v3815_v60, 16  ;;  %v2951_v14 = vshrl.u32 %v3816_v1, 16  ;;  %v2959_v16 = vshrl.u32 %v3817_v7, 16  ;;  %v3160_v60 = vld [vmem:[%s5341_s3 + $0x38] sm:$0x11] }
  0x2a   : > { %v2765_v13 = vcombine.low %v2757_v3, %v2764_v4  ;;  %v3785_v17 = vcombine.low %v2155_v2, %v2155_v2  ;;  %v2863_v18 = vcombine.low %v2850_v6, %v2857_v8  ;;  %v2967_v23 = vshrl.u32 %v3818_v10, 16 }
  0x2b   : > { %v2870_v20 = vrot.slane %v2862_v9, %v4168_v19  ;;  %v2944_v22 = vpack.i.b16 %v2943_v11, %v2943_v11  ;;  %v2952_v24 = vpack.i.b16 %v2951_v14, %v2951_v14  ;;  %v2960_v25 = vpack.i.b16 %v2959_v16, %v2959_v16  ;;  %v1804_v11 = vld [vmem:[%s5341_s3 + $0x10] sm:$0x44] }
  0x2c   : > { %2766 = vrot.lane.b32.xlu1 %v2765_v13, %s4077_s29  ;;  %v3786_v26 = vcombine.high %v2155_v2, %v2155_v2  ;;  %v3787_v27 = vcombine.low %v2156_v12, %v2156_v12  ;;  %v2877_v28 = vrot.slane %v2863_v18, %v4168_v19  ;;  %v2968_v30 = vpack.i.b16 %v2967_v23, %v2967_v23  ;;  %v1805_v23 = vld [vmem:[%s5341_s3 + $0x18] sm:$0x44] }
  0x2d   : > { %v2949_v29 = vrot.slane %v2944_v22, %v4219_v37  ;;  %v3788_v31 = vcombine.high %v2156_v12, %v2156_v12  ;;  %v2957_v33 = vrot.slane %v2952_v24, %v4219_v37  ;;  %v2965_v34 = vrot.slane %v2960_v25, %v4219_v37 }
  0x2e   : > { %v2168_v35 = vpack.i.b16 %v3785_v17, %v3785_v17  ;;  %v2175_v36 = vpack.i.b16 %v3786_v26, %v3786_v26  ;;  %v2878_v38 = vcombine.low %v2870_v20, %v2877_v28  ;;  %v2973_v39 = vrot.slane %v2968_v30, %v4219_v37 }
  0x2f   : > { %v2182_v40 = vpack.i.b16 %v3787_v27, %v3787_v27  ;;  %v2189_v41 = vpack.i.b16 %v3788_v31, %v3788_v31  ;;  %v2978_v43 = vcombine.low %v2949_v29, %v2957_v33  ;;  %v3799_v46 = vcombine.low %v2472_v32, %v2472_v32 }
  0x30   : > { %v2173_v44 = vrot.slane %v2168_v35, %v4160_v15  ;;  %v2180_v45 = vrot.slane %v2175_v36, %v4160_v15  ;;  %2879 = vrot.lane.b32.xlu1 %v2878_v38, %s4078_s8  ;;  %v2979_v47 = vcombine.low %v2965_v34, %v2973_v39  ;;  %v3800_v50 = vcombine.high %v2472_v32, %v2472_v32 }
  0x31   : > { %v2187_v48 = vrot.slane %v2182_v40, %v4160_v15  ;;  %v2194_v49 = vrot.slane %v2189_v41, %v4160_v15  ;;  %v2986_v52 = vrot.slane %v2978_v43, %v4168_v19  ;;  %v3801_v54 = vcombine.low %v2473_v42, %v2473_v42  ;;  %v2269_v41 = vld [vmem:[%s5341_s3 + $0x20] sm:$0x11] }
  0x32   : > { %v2199_v53 = vcombine.low %v2173_v44, %v2180_v45  ;;  %v3802_v55 = vcombine.high %v2473_v42, %v2473_v42  ;;  %v2993_v56 = vrot.slane %v2979_v47, %v4168_v19  ;;  %v2485_v58 = vshrl.u32 %v3799_v46, 16 }
  0x33   : > { %v2200_v57 = vcombine.low %v2187_v48, %v2194_v49  ;;  %v2493_v59 = vshrl.u32 %v3800_v50, 16  ;;  %v2501_v63 = vshrl.u32 %v3801_v54, 16  ;;  %v3823_v1 = vcombine.low %v3159_v51, %v3159_v51  ;;  %v2270_v50 = vld [vmem:[%s5341_s3 + $0x28] sm:$0x11] }
  0x34   : > { %v2207_v62 = vrot.slane %v2199_v53, %v4168_v19  ;;  %v2509_v0 = vshrl.u32 %v3802_v55, 16  ;;  %v2994_v2 = vcombine.low %v2986_v52, %v2993_v56  ;;  %v2486_v4 = vpack.i.b16 %v2485_v58, %v2485_v58 }
  0x35   : > { %v2214_v3 = vrot.slane %v2200_v57, %v4168_v19  ;;  %v2494_v6 = vpack.i.b16 %v2493_v59, %v2493_v59  ;;  %v2502_v7 = vpack.i.b16 %v2501_v63, %v2501_v63  ;;  %v3824_v9 = vcombine.high %v3159_v51, %v3159_v51 }
  0x36   : > { %v2510_v8 = vpack.i.b16 %v2509_v0, %v2509_v0  ;;  %v3825_v10 = vcombine.low %v3160_v60, %v3160_v60  ;;  %2995 = vrot.lane.b32.xlu1 %v2994_v2, %s4079_s19  ;;  %v2491_v13 = vrot.slane %v2486_v4, %v4171_v21  ;;  %v3826_v16 = vcombine.high %v3160_v60, %v3160_v60  ;;  %v2036_v0 = vld [vmem:[%s5341_s3 + $0x10] sm:$0x88] }
  0x37   : > { %v2215_v12 = vcombine.low %v2207_v62, %v2214_v3  ;;  %v2499_v14 = vrot.slane %v2494_v6, %v4171_v21  ;;  %v2507_v17 = vrot.slane %v2502_v7, %v4171_v21  ;;  %v3172_v20 = vshrl.u32 %v3823_v1, 16 }
  0x38   : > { %v2515_v18 = vrot.slane %v2510_v8, %v4171_v21  ;;  %v3180_v22 = vshrl.u32 %v3824_v9, 16  ;;  %v3188_v25 = vshrl.u32 %v3825_v10, 16  ;;  %v3196_v26 = vshrl.u32 %v3826_v16, 16  ;;  %v2037_v10 = vld [vmem:[%s5341_s3 + $0x18] sm:$0x88] }
  0x39   : > { %v2520_v24 = vcombine.low %v2491_v13, %v2499_v14  ;;  %v3773_v27 = vcombine.low %v1804_v11, %v1804_v11  ;;  %v3173_v29 = vpack.i.b16 %v3172_v20, %v3172_v20  ;;  %v3774_v31 = vcombine.high %v1804_v11, %v1804_v11 }
  0x3a   : > { %v2521_v28 = vcombine.low %v2507_v17, %v2515_v18  ;;  %v3181_v30 = vpack.i.b16 %v3180_v22, %v3180_v22  ;;  %2216 = vrot.lane.b32.xlu1 %v2215_v12, %s4080_s22  ;;  %v3189_v33 = vpack.i.b16 %v3188_v25, %v3188_v25  ;;  %v3197_v34 = vpack.i.b16 %v3196_v26, %v3196_v26  ;;  %v1690_v26 = vld [vmem:[%s5341_s3 + $0x10] sm:$0x44]  ;;  %s4089_s22 = smov 66  }
  0x3b   : > { %v2528_v32 = vrot.slane %v2520_v24, %v4168_v19  ;;  %v3775_v35 = vcombine.low %v1805_v23, %v1805_v23  ;;  %v3178_v38 = vrot.slane %v3173_v29, %v4160_v15  ;;  %v3776_v40 = vcombine.high %v1805_v23, %v1805_v23 }
  0x3c   : > { %v2535_v36 = vrot.slane %v2521_v28, %v4168_v19  ;;  %v3186_v39 = vrot.slane %v3181_v30, %v4160_v15  ;;  %v3194_v42 = vrot.slane %v3189_v33, %v4160_v15  ;;  %v3202_v43 = vrot.slane %v3197_v34, %v4160_v15 }
  0x3d   : > { %v1817_v44 = vshrl.u32 %v3773_v27, 16  ;;  %v1825_v45 = vshrl.u32 %v3774_v31, 16  ;;  %v1833_v48 = vshrl.u32 %v3775_v35, 16  ;;  %v1841_v49 = vshrl.u32 %v3776_v40, 16  ;;  %v1691_v35 = vld [vmem:[%s5341_s3 + $0x18] sm:$0x44] }
  0x3e   : > { %v2536_v46 = vcombine.low %v2528_v32, %v2535_v36  ;;  %v3207_v47 = vcombine.low %v3178_v38, %v3186_v39  ;;  %v3208_v51 = vcombine.low %v3194_v42, %v3202_v43  ;;  %v3789_v54 = vcombine.low %v2269_v41, %v2269_v41 }
  0x3f   : > { %v1818_v52 = vpack.i.b16 %v1817_v44, %v1817_v44  ;;  %v1826_v53 = vpack.i.b16 %v1825_v45, %v1825_v45  ;;  %v1834_v56 = vpack.i.b16 %v1833_v48, %v1833_v48  ;;  %v1842_v57 = vpack.i.b16 %v1841_v49, %v1841_v49  ;;  %v1339_v49 = vld [vmem:[%s5341_s3 + $0x10] sm:$0x11] }
  0x40   : > { %2537 = vrot.lane.b32.xlu1 %v2536_v46, %s4081_s30  ;;  %v3215_v55 = vrot.slane %v3207_v47, %v4168_v19  ;;  %v3790_v58 = vcombine.high %v2269_v41, %v2269_v41  ;;  %v3222_v59 = vrot.slane %v3208_v51, %v4168_v19  ;;  %v3791_v63 = vcombine.low %v2270_v50, %v2270_v50 }
  0x41   : > { %v1823_v60 = vrot.slane %v1818_v52, %v4198_v61  ;;  %v1831_v62 = vrot.slane %v1826_v53, %v4198_v61  ;;  %v1839_v1 = vrot.slane %v1834_v56, %v4198_v61  ;;  %v1847_v2 = vrot.slane %v1842_v57, %v4198_v61 }
  0x42   : > { %v3792_v3 = vcombine.high %v2270_v50, %v2270_v50  ;;  %v2282_v4 = vshrl.u32 %v3789_v54, 16  ;;  %v3223_v6 = vcombine.low %v3215_v55, %v3222_v59  ;;  %v2290_v8 = vshrl.u32 %v3790_v58, 16  ;;  %v1340_v58 = vld [vmem:[%s5341_s3 + $0x18] sm:$0x11] }
  0x43   : > { %v1852_v7 = vcombine.low %v1823_v60, %v1831_v62  ;;  %v2298_v9 = vshrl.u32 %v3791_v63, 16  ;;  %v1853_v11 = vcombine.low %v1839_v1, %v1847_v2  ;;  %v3781_v14 = vcombine.low %v2036_v0, %v2036_v0 }
  0x44   : > { %v2283_v12 = vpack.i.b16 %v2282_v4, %v2282_v4  ;;  %v2306_v13 = vshrl.u32 %v3792_v3, 16  ;;  %3224 = vrot.lane.b32.xlu0 %v3223_v6, %s4082_s10  ;;  %v2291_v17 = vpack.i.b16 %v2290_v8, %v2290_v8  ;;  %v3782_v20 = vcombine.high %v2036_v0, %v2036_v0  ;;  %v1922_v4 = vld [vmem:[%s5341_s3 + $0x10] sm:$0x88] }
  0x45   : > { %v1860_v16 = vrot.slane %v1852_v7, %v4168_v19  ;;  %v2299_v18 = vpack.i.b16 %v2298_v9, %v2298_v9  ;;  %v1867_v22 = vrot.slane %v1853_v11, %v4168_v19  ;;  %v3783_v25 = vcombine.low %v2037_v10, %v2037_v10 }
  0x46   : > { %v2288_v23 = vrot.slane %v2283_v12, %v4160_v15  ;;  %v2307_v24 = vpack.i.b16 %v2306_v13, %v2306_v13  ;;  %v2296_v27 = vrot.slane %v2291_v17, %v4160_v15  ;;  %v3784_v29 = vcombine.high %v2037_v10, %v2037_v10 }
  0x47   : > { %v2304_v28 = vrot.slane %v2299_v18, %v4160_v15  ;;  %v2049_v30 = vshrl.u32 %v3781_v14, 16  ;;  %v1868_v31 = vcombine.low %v1860_v16, %v1867_v22  ;;  %v2057_v33 = vshrl.u32 %v3782_v20, 16  ;;  %v1923_v18 = vld [vmem:[%s5341_s3 + $0x18] sm:$0x88] }
  0x48   : > { %v2312_v32 = vrot.slane %v2307_v24, %v4160_v15  ;;  %v2065_v34 = vshrl.u32 %v3783_v25, 16  ;;  %v2317_v36 = vcombine.low %v2288_v23, %v2296_v27  ;;  %v2073_v39 = vshrl.u32 %v3784_v29, 16 }
  0x49   : > { %v2050_v38 = vpack.i.b16 %v2049_v30, %v2049_v30  ;;  %v3769_v40 = vcombine.low %v1690_v26, %v1690_v26  ;;  %1869 = vrot.lane.b32.xlu1 %v1868_v31, %s4083_s20  ;;  %v2058_v42 = vpack.i.b16 %v2057_v33, %v2057_v33  ;;  %v3770_v44 = vcombine.high %v1690_v26, %v1690_v26 }
  0x4a   : > { %v2318_v41 = vcombine.low %v2304_v28, %v2312_v32  ;;  %v2066_v43 = vpack.i.b16 %v2065_v34, %v2065_v34  ;;  %v2325_v45 = vrot.slane %v2317_v36, %v4168_v19  ;;  %v2074_v47 = vpack.i.b16 %v2073_v39, %v2073_v39  ;;  %v1571_v34 = vld [vmem:[%s5341_s3 + $0x10] sm:$0x22] }
  0x4b   : > { %v2055_v46 = vrot.slane %v2050_v38, %v4219_v37  ;;  %v3771_v48 = vcombine.low %v1691_v35, %v1691_v35  ;;  %v2063_v51 = vrot.slane %v2058_v42, %v4219_v37  ;;  %v3772_v53 = vcombine.high %v1691_v35, %v1691_v35 }
  0x4c   : > { %v2332_v50 = vrot.slane %v2318_v41, %v4168_v19  ;;  %v2071_v52 = vrot.slane %v2066_v43, %v4219_v37  ;;  %v2079_v54 = vrot.slane %v2074_v47, %v4219_v37  ;;  %v1703_v55 = vpack.i.b16 %v3769_v40, %v3769_v40 }
  0x4d   : > { %v1710_v56 = vpack.i.b16 %v3770_v44, %v3770_v44  ;;  %v1717_v57 = vpack.i.b16 %v3771_v48, %v3771_v48  ;;  %v2084_v60 = vcombine.low %v2055_v46, %v2063_v51  ;;  %v1724_v62 = vpack.i.b16 %v3772_v53, %v3772_v53  ;;  %v1572_v44 = vld [vmem:[%s5341_s3 + $0x18] sm:$0x22]  ;;  %v1225_v53 = vld [vmem:[%s5341_s3 + $0x10] sm:$0x11] }
  0x4e   : > { %v2333_v59 = vcombine.low %v2325_v45, %v2332_v50  ;;  %v3757_v63 = vcombine.low %v1339_v49, %v1339_v49  ;;  %v2085_v0 = vcombine.low %v2071_v52, %v2079_v54  ;;  %v1708_v1 = vrot.slane %v1703_v55, %v4198_v61 }
  0x4f   : > { %v1715_v2 = vrot.slane %v1710_v56, %v4198_v61  ;;  %v1722_v3 = vrot.slane %v1717_v57, %v4198_v61  ;;  %v2092_v6 = vrot.slane %v2084_v60, %v4168_v19  ;;  %v1729_v7 = vrot.slane %v1724_v62, %v4198_v61 }
  0x50   : > { %2334 = vrot.lane.b32.xlu0 %v2333_v59, %s4084_s5  ;;  %v3758_v8 = vcombine.high %v1339_v49, %v1339_v49  ;;  %v3759_v9 = vcombine.low %v1340_v58, %v1340_v58  ;;  %v2099_v10 = vrot.slane %v2085_v0, %v4168_v19  ;;  %v3760_v12 = vcombine.high %v1340_v58, %v1340_v58  ;;  %s4102_s5 = smov 56  }
  0x51   : > { %v1734_v11 = vcombine.low %v1708_v1, %v1715_v2  ;;  %v1352_v13 = vshrl.u32 %v3757_v63, 16  ;;  %v1735_v14 = vcombine.low %v1722_v3, %v1729_v7  ;;  %v3777_v20 = vcombine.low %v1922_v4, %v1922_v4  ;;  %v1226_v2 = vld [vmem:[%s5341_s3 + $0x18] sm:$0x11] }
  0x52   : > { %v1360_v16 = vshrl.u32 %v3758_v8, 16  ;;  %v1368_v17 = vshrl.u32 %v3759_v9, 16  ;;  %v2100_v22 = vcombine.low %v2092_v6, %v2099_v10  ;;  %v1376_v25 = vshrl.u32 %v3760_v12, 16 }
  0x53   : > { %v1742_v23 = vrot.slane %v1734_v11, %v4168_v19  ;;  %v1353_v24 = vpack.i.b16 %v1352_v13, %v1352_v13  ;;  %v1749_v26 = vrot.slane %v1735_v14, %v4168_v19  ;;  %v3778_v29 = vcombine.high %v1922_v4, %v1922_v4 }
  0x54   : > { %v1361_v27 = vpack.i.b16 %v1360_v16, %v1360_v16  ;;  %v1369_v28 = vpack.i.b16 %v1368_v17, %v1368_v17  ;;  %2101 = vrot.lane.b32.xlu1 %v2100_v22, %s4085_s9  ;;  %v1377_v31 = vpack.i.b16 %v1376_v25, %v1376_v25  ;;  %v3779_v32 = vcombine.low %v1923_v18, %v1923_v18  ;;  %s4107_s9 = smov 48  }
  0x55   : > { %v1358_v30 = vrot.slane %v1353_v24, %v4160_v15  ;;  %v3780_v33 = vcombine.high %v1923_v18, %v1923_v18  ;;  %v1750_v35 = vcombine.low %v1742_v23, %v1749_v26  ;;  %v1935_v39 = vpack.i.b16 %v3777_v20, %v3777_v20  ;;  %v873_v24 = vld [vmem:[%s5341_s3] sm:$0x44] }
  0x56   : > { %v1366_v36 = vrot.slane %v1361_v27, %v4160_v15  ;;  %v1374_v38 = vrot.slane %v1369_v28, %v4160_v15  ;;  %v1382_v40 = vrot.slane %v1377_v31, %v4160_v15  ;;  %v1942_v41 = vpack.i.b16 %v3778_v29, %v3778_v29  ;;  %v874_v31 = vld [vmem:[%s5341_s3 + $0x8] sm:$0x44] }
  0x57   : > { %v1949_v42 = vpack.i.b16 %v3779_v32, %v3779_v32  ;;  %v1956_v43 = vpack.i.b16 %v3780_v33, %v3780_v33  ;;  %1751 = vrot.lane.b32.xlu0 %v1750_v35, %s4086_s21  ;;  %v1940_v46 = vrot.slane %v1935_v39, %v4219_v37  ;;  %v3765_v47 = vcombine.low %v1571_v34, %v1571_v34 }
  0x58   : > { %v1387_v45 = vcombine.low %v1358_v30, %v1366_v36  ;;  %v3766_v48 = vcombine.high %v1571_v34, %v1571_v34  ;;  %v1388_v49 = vcombine.low %v1374_v38, %v1382_v40  ;;  %v1947_v50 = vrot.slane %v1942_v41, %v4219_v37 }
  0x59   : > { %v1954_v51 = vrot.slane %v1949_v42, %v4219_v37  ;;  %v1961_v52 = vrot.slane %v1956_v43, %v4219_v37  ;;  %v3767_v55 = vcombine.low %v1572_v44, %v1572_v44  ;;  %v3768_v56 = vcombine.high %v1572_v44, %v1572_v44  ;;  %v1457_v44 = vld [vmem:[%s5341_s3 + $0x10] sm:$0x22] }
  0x5a   : > { %v1395_v54 = vrot.slane %v1387_v45, %v4168_v19  ;;  %v1584_v57 = vshrl.u32 %v3765_v47, 16  ;;  %v1402_v58 = vrot.slane %v1388_v49, %v4168_v19  ;;  %v1966_v59 = vcombine.low %v1940_v46, %v1947_v50  ;;  %v1458_v45 = vld [vmem:[%s5341_s3 + $0x18] sm:$0x22] }
  0x5b   : > { %v1967_v60 = vcombine.low %v1954_v51, %v1961_v52  ;;  %v1592_v62 = vshrl.u32 %v3766_v48, 16  ;;  %v1600_v0 = vshrl.u32 %v3767_v55, 16  ;;  %v1608_v1 = vshrl.u32 %v3768_v56, 16 }
  0x5c   : > { %v1585_v63 = vpack.i.b16 %v1584_v57, %v1584_v57  ;;  %v3753_v3 = vcombine.low %v1225_v53, %v1225_v53  ;;  %v1403_v4 = vcombine.low %v1395_v54, %v1402_v58  ;;  %v1974_v6 = vrot.slane %v1966_v59, %v4168_v19 }
  0x5d   : > { %v1981_v7 = vrot.slane %v1967_v60, %v4168_v19  ;;  %v1593_v8 = vpack.i.b16 %v1592_v62, %v1592_v62  ;;  %v1601_v10 = vpack.i.b16 %v1600_v0, %v1600_v0  ;;  %v1609_v11 = vpack.i.b16 %v1608_v1, %v1608_v1 }
  0x5e   : > { %v1590_v9 = vrot.slane %v1585_v63, %v4171_v21  ;;  %v3754_v12 = vcombine.high %v1225_v53, %v1225_v53  ;;  %1404 = vrot.lane.b32.xlu1 %v1403_v4, %s4087_s27  ;;  %v3755_v16 = vcombine.low %v1226_v2, %v1226_v2  ;;  %v3756_v17 = vcombine.high %v1226_v2, %v1226_v2 }
  0x5f   : > { %v1982_v13 = vcombine.low %v1974_v6, %v1981_v7  ;;  %v1598_v14 = vrot.slane %v1593_v8, %v4171_v21  ;;  %v1606_v18 = vrot.slane %v1601_v10, %v4171_v21  ;;  %v1614_v20 = vrot.slane %v1609_v11, %v4171_v21  ;;  %v1106_v11 = vld [vmem:[%s5341_s3] sm:$0x88] }
  0x60   : > { %v1238_v22 = vpack.i.b16 %v3753_v3, %v3753_v3  ;;  %v1245_v23 = vpack.i.b16 %v3754_v12, %v3754_v12  ;;  %v1252_v26 = vpack.i.b16 %v3755_v16, %v3755_v16  ;;  %v1259_v27 = vpack.i.b16 %v3756_v17, %v3756_v17  ;;  %v1107_v12 = vld [vmem:[%s5341_s3 + $0x8] sm:$0x88]  ;;  %v759_v16 = vld [vmem:[%s5341_s3] sm:$0x44] }
  0x61   : > { %1983 = vrot.lane.b32.xlu0 %v1982_v13, %s4088_s7  ;;  %v1619_v25 = vcombine.low %v1590_v9, %v1598_v14  ;;  %v1620_v28 = vcombine.low %v1606_v18, %v1614_v20  ;;  %v3741_v35 = vcombine.low %v873_v24, %v873_v24  ;;  %v3742_v39 = vcombine.high %v873_v24, %v873_v24  ;;  %s4106_s7 = smov 55  }
  0x62   : > { %v1243_v29 = vrot.slane %v1238_v22, %v4160_v15  ;;  %v1250_v30 = vrot.slane %v1245_v23, %v4160_v15  ;;  %v1257_v33 = vrot.slane %v1252_v26, %v4160_v15  ;;  %v1264_v34 = vrot.slane %v1259_v27, %v4160_v15  ;;  %v760_v26 = vld [vmem:[%s5341_s3 + $0x8] sm:$0x44] }
  0x63   : > { %v1627_v32 = vrot.slane %v1619_v25, %v4168_v19  ;;  %v1634_v36 = vrot.slane %v1620_v28, %v4168_v19  ;;  %v3743_v41 = vcombine.low %v874_v31, %v874_v31  ;;  %v3744_v42 = vcombine.high %v874_v31, %v874_v31 }
  0x64   : > { %v1269_v38 = vcombine.low %v1243_v29, %v1250_v30  ;;  %v1270_v40 = vcombine.low %v1257_v33, %v1264_v34  ;;  %v886_v43 = vshrl.u32 %v3741_v35, 16  ;;  %v894_v48 = vshrl.u32 %v3742_v39, 16 }
  0x65   : > { %v1635_v46 = vcombine.low %v1627_v32, %v1634_v36  ;;  %v902_v51 = vshrl.u32 %v3743_v41, 16  ;;  %v910_v52 = vshrl.u32 %v3744_v42, 16  ;;  %v3761_v54 = vcombine.low %v1457_v44, %v1457_v44 }
  0x66   : > { %v1277_v47 = vrot.slane %v1269_v38, %v4168_v19  ;;  %v1284_v49 = vrot.slane %v1270_v40, %v4168_v19  ;;  %v887_v50 = vpack.i.b16 %v886_v43, %v886_v43  ;;  %v895_v53 = vpack.i.b16 %v894_v48, %v894_v48  ;;  %v526_v48 = vld [vmem:[%s5341_s3] sm:$0x22] }
  0x67   : > { %1636 = vrot.lane.b32.xlu1 %v1635_v46, %s4089_s22  ;;  %v3762_v55 = vcombine.high %v1457_v44, %v1457_v44  ;;  %v3763_v56 = vcombine.low %v1458_v45, %v1458_v45  ;;  %v903_v59 = vpack.i.b16 %v902_v51, %v902_v51  ;;  %v911_v60 = vpack.i.b16 %v910_v52, %v910_v52 }
  0x68   : > { %v1285_v57 = vcombine.low %v1277_v47, %v1284_v49  ;;  %v892_v58 = vrot.slane %v887_v50, %v4198_v61  ;;  %v900_v62 = vrot.slane %v895_v53, %v4198_v61  ;;  %v3764_v63 = vcombine.high %v1458_v45, %v1458_v45 }
  0x69   : > { %v1470_v0 = vpack.i.b16 %v3761_v54, %v3761_v54  ;;  %v1477_v1 = vpack.i.b16 %v3762_v55, %v3762_v55  ;;  %v908_v2 = vrot.slane %v903_v59, %v4198_v61  ;;  %v916_v3 = vrot.slane %v911_v60, %v4198_v61 }
  0x6a   : > { %1286 = vrot.lane.b32.xlu0 %v1285_v57, %s4075_s18  ;;  %v1484_v4 = vpack.i.b16 %v3763_v56, %v3763_v56  ;;  %v921_v6 = vcombine.low %v892_v58, %v900_v62  ;;  %v1491_v9 = vpack.i.b16 %v3764_v63, %v3764_v63  ;;  %v4090_v10 = vmov 0   ;;  %v527_v57 = vld [vmem:[%s5341_s3 + $0x8] sm:$0x22] }
  0x6b   : > { %v1475_v7 = vrot.slane %v1470_v0, %v4171_v21  ;;  %v1482_v8 = vrot.slane %v1477_v1, %v4171_v21  ;;  %3386 = vst [vmem:[#allocation3 + $0xd0] sm:$0xcc] %v4090_v10  ;;  %3387 = vst [vmem:[#allocation3 + $0xd8] sm:$0xcc] %v4090_v10  ;;  %3599 = vmatprep.mubr.bf16.mxu0 %v4090_v10  ;;  %v922_v13 = vcombine.low %v908_v2, %v916_v3  ;;  %vm280_vm1 = vcmask 1041992  }
  0x6c   : > { %v1489_v14 = vrot.slane %v1484_v4, %v4171_v21  ;;  %vm281_vm2 = vcmask 142338   ;;  %3640 = vmatprep.mubr.bf16.mxu1 %v4090_v10  ;;  %3909 = vset.pattern.permute.xlu0 %v4090_v10  ;;  %v929_v17 = vrot.slane %v921_v6, %v4168_v19  ;;  %v1496_v18 = vrot.slane %v1491_v9, %v4171_v21  ;;  %v992_v2 = vld [vmem:[%s5341_s3] sm:$0x88] }
  0x6d   : > { %v1501_v20 = vcombine.low %v1475_v7, %v1482_v8  ;;  %vm282_vm3 = vmor %vm281_vm2, %vm280_vm1  ;;  %v936_v22 = vrot.slane %v922_v13, %v4168_v19  ;;  %v3749_v23 = vcombine.low %v1106_v11, %v1106_v11  ;;  %v3750_v24 = vcombine.high %v1106_v11, %v1106_v11 }
  0x6e   : > { %283 = vst.msk [vmem:[#allocation2 + $0x8] sm:$0xf] %vm282_vm3, %v4090_v10  ;;  %v3751_v25 = vcombine.low %v1107_v12, %v1107_v12  ;;  %v1502_v27 = vcombine.low %v1489_v14, %v1496_v18  ;;  %v3752_v29 = vcombine.high %v1107_v12, %v1107_v12  ;;  %v3737_v30 = vcombine.low %v759_v16, %v759_v16 }
  0x6f   : > { %v1509_v28 = vrot.slane %v1501_v20, %v4168_v19  ;;  %v937_v31 = vcombine.low %v929_v17, %v936_v22  ;;  %v1119_v32 = vshrl.u32 %v3749_v23, 16  ;;  %v1127_v33 = vshrl.u32 %v3750_v24, 16 }
  0x70   : > { %v1135_v34 = vshrl.u32 %v3751_v25, 16  ;;  %v1516_v35 = vrot.slane %v1502_v27, %v4168_v19  ;;  %v1143_v36 = vshrl.u32 %v3752_v29, 16  ;;  %v3738_v38 = vcombine.high %v759_v16, %v759_v16 }
  0x71   : > { %v3739_v39 = vcombine.low %v760_v26, %v760_v26  ;;  %938 = vrot.lane.b32.xlu1 %v937_v31, %s4079_s19  ;;  %v1120_v40 = vpack.i.b16 %v1119_v32, %v1119_v32  ;;  %v1128_v41 = vpack.i.b16 %v1127_v33, %v1127_v33  ;;  %v3740_v43 = vcombine.high %v760_v26, %v760_v26  ;;  %s4091_s19 = smov 65  }
  0x72   : > { %v1136_v42 = vpack.i.b16 %v1135_v34, %v1135_v34  ;;  %v1517_v44 = vcombine.low %v1509_v28, %v1516_v35  ;;  %v1144_v45 = vpack.i.b16 %v1143_v36, %v1143_v36  ;;  %v772_v46 = vpack.i.b16 %v3737_v30, %v3737_v30  ;;  %v406_v28 = vld [vmem:[%s5341_s3] sm:$0x11]  ;;  %v407_v36 = vld [vmem:[%s5341_s3 + $0x8] sm:$0x11] }
  0x73   : > { %v779_v47 = vpack.i.b16 %v3738_v38, %v3738_v38  ;;  %v1125_v49 = vrot.slane %v1120_v40, %v4219_v37  ;;  %v1133_v50 = vrot.slane %v1128_v41, %v4219_v37  ;;  %v786_v52 = vpack.i.b16 %v3739_v39, %v3739_v39 }
  0x74   : > { %v1141_v51 = vrot.slane %v1136_v42, %v4219_v37  ;;  %1518 = vrot.lane.b32.xlu0 %v1517_v44, %s4091_s19  ;;  %v1149_v53 = vrot.slane %v1144_v45, %v4219_v37  ;;  %v777_v54 = vrot.slane %v772_v46, %v4198_v61  ;;  %v793_v56 = vpack.i.b16 %v3740_v43, %v3740_v43  ;;  %s4099_s19 = smov 111  }
  0x75   : > { %v784_v55 = vrot.slane %v779_v47, %v4198_v61  ;;  %v1154_v58 = vcombine.low %v1125_v49, %v1133_v50  ;;  %v791_v59 = vrot.slane %v786_v52, %v4198_v61  ;;  %v3729_v60 = vcombine.low %v526_v48, %v526_v48  ;;  %v640_v50 = vld [vmem:[%s5341_s3] sm:$0x22] }
  0x76   : > { %v1155_v62 = vcombine.low %v1141_v51, %v1149_v53  ;;  %v798_v63 = vrot.slane %v793_v56, %v4198_v61  ;;  %v3730_v1 = vcombine.high %v526_v48, %v526_v48  ;;  %v3731_v4 = vcombine.low %v527_v57, %v527_v57  ;;  %v993_v61 = vld [vmem:[%s5341_s3 + $0x8] sm:$0x88] }
  0x77   : > { %v803_v0 = vcombine.low %v777_v54, %v784_v55  ;;  %v1162_v3 = vrot.slane %v1154_v58, %v4168_v19  ;;  %v3732_v6 = vcombine.high %v527_v57, %v527_v57  ;;  %v539_v7 = vpack.i.b16 %v3729_v60, %v3729_v60  ;;  %v641_v54 = vld [vmem:[%s5341_s3 + $0x8] sm:$0x22] }
  0x78   : > { %v1169_v8 = vrot.slane %v1155_v62, %v4168_v19  ;;  %v804_v9 = vcombine.low %v791_v59, %v798_v63  ;;  %v546_v12 = vpack.i.b16 %v3730_v1, %v3730_v1  ;;  %v553_v14 = vpack.i.b16 %v3731_v4, %v3731_v4 }
  0x79   : > { %v811_v11 = vrot.slane %v803_v0, %v4168_v19  ;;  %v544_v13 = vrot.slane %v539_v7, %v4171_v21  ;;  %v560_v16 = vpack.i.b16 %v3732_v6, %v3732_v6  ;;  %v3745_v17 = vcombine.low %v992_v2, %v992_v2 }
  0x7a   : > { %v1170_v18 = vcombine.low %v1162_v3, %v1169_v8  ;;  %v818_v20 = vrot.slane %v804_v9, %v4168_v19  ;;  %v551_v22 = vrot.slane %v546_v12, %v4171_v21  ;;  %v3746_v23 = vcombine.high %v992_v2, %v992_v2 }
  0x7b   : > { %v558_v24 = vrot.slane %v553_v14, %v4171_v21  ;;  %v565_v25 = vrot.slane %v560_v16, %v4171_v21  ;;  %v3747_v26 = vcombine.low %v993_v61, %v993_v61  ;;  %v3748_v27 = vcombine.high %v993_v61, %v993_v61 }
  0x7c   : > { %1171 = vrot.lane.b32.xlu1 %v1170_v18, %s4082_s10  ;;  %v819_v29 = vcombine.low %v811_v11, %v818_v20  ;;  %v570_v30 = vcombine.low %v544_v13, %v551_v22  ;;  %v1005_v31 = vpack.i.b16 %v3745_v17, %v3745_v17  ;;  %v1012_v32 = vpack.i.b16 %v3746_v23, %v3746_v23  ;;  %s4104_s10 = smov 63  }
  0x7d   : > { %v571_v33 = vcombine.low %v558_v24, %v565_v25  ;;  %v1019_v34 = vpack.i.b16 %v3747_v26, %v3747_v26  ;;  %v1026_v35 = vpack.i.b16 %v3748_v27, %v3748_v27  ;;  %v3725_v41 = vcombine.low %v406_v28, %v406_v28 }
  0x7e   : > { %820 = vrot.lane.b32.xlu0 %v819_v29, %s4078_s8  ;;  %v578_v38 = vrot.slane %v570_v30, %v4168_v19  ;;  %v1010_v39 = vrot.slane %v1005_v31, %v4219_v37  ;;  %v1017_v40 = vrot.slane %v1012_v32, %v4219_v37  ;;  %v3726_v45 = vcombine.high %v406_v28, %v406_v28  ;;  %v3046_v28 = vld [vmem:[#allocation2 + $0xa] sm:$0x3]  ;;  %s4105_s8 = smov 46  }
  0x7f   : > { %v585_v42 = vrot.slane %v571_v33, %v4168_v19  ;;  %v1024_v43 = vrot.slane %v1019_v34, %v4219_v37  ;;  %v1031_v44 = vrot.slane %v1026_v35, %v4219_v37  ;;  %v3727_v47 = vcombine.low %v407_v36, %v407_v36 }
  0x80   : > { %v1036_v46 = vcombine.low %v1010_v39, %v1017_v40  ;;  %v3728_v48 = vcombine.high %v407_v36, %v407_v36  ;;  %v419_v49 = vshrl.u32 %v3725_v41, 16  ;;  %v427_v53 = vshrl.u32 %v3726_v45, 16  ;;  %v3275_v40 = vld [vmem:[#allocation2 + $0xa] sm:$0x3] }
  0x81   : > { %v586_v51 = vcombine.low %v578_v38, %v585_v42  ;;  %v1037_v52 = vcombine.low %v1024_v43, %v1031_v44  ;;  %v435_v37 = vshrl.u32 %v3727_v47, 16  ;;  %v3733_v60 = vcombine.low %v640_v50, %v640_v50  ;;  %v2588_v44 = vld [vmem:[#allocation2 + $0xa] sm:$0x3] }
  0x82   : > { %v1044_v55 = vrot.slane %v1036_v46, %v4168_v19  ;;  %v420_v56 = vpack.i.b16 %v419_v49, %v419_v49  ;;  %v443_v57 = vshrl.u32 %v3728_v48, 16  ;;  %v428_v59 = vpack.i.b16 %v427_v53, %v427_v53  ;;  %v2700_v49 = vld [vmem:[#allocation2 + $0xa] sm:$0x3] }
  0x83   : > { %587 = vrot.lane.b32.xlu1 %v586_v51, %s4076_s23  ;;  %v1051_v58 = vrot.slane %v1037_v52, %v4168_v19  ;;  %v3734_v62 = vcombine.high %v640_v50, %v640_v50  ;;  %v436_v0 = vpack.i.b16 %v435_v37, %v435_v37  ;;  %v3735_v2 = vcombine.low %v641_v54, %v641_v54  ;;  %s4093_s23 = smov 110  }
  0x84   : > { %v425_v63 = vrot.slane %v420_v56, %v4160_v15  ;;  %v444_v1 = vpack.i.b16 %v443_v57, %v443_v57  ;;  %v433_v4 = vrot.slane %v428_v59, %v4160_v15  ;;  %v3736_v6 = vcombine.high %v641_v54, %v641_v54  ;;  %v2817_v54 = vld [vmem:[#allocation2 + $0xa] sm:$0x3] }
  0x85   : > { %v1052_v3 = vcombine.low %v1044_v55, %v1051_v58  ;;  %v653_v7 = vshrl.u32 %v3733_v60, 16  ;;  %v441_v8 = vrot.slane %v436_v0, %v4160_v15  ;;  %v661_v11 = vshrl.u32 %v3734_v62, 16 }
  0x86   : > { %v449_v9 = vrot.slane %v444_v1, %v4160_v15  ;;  %v669_v12 = vshrl.u32 %v3735_v2, 16  ;;  %v454_v61 = vcombine.low %v425_v63, %v433_v4  ;;  %v677_v14 = vshrl.u32 %v3736_v6, 16  ;;  %v2929_v2 = vld [vmem:[#allocation2 + $0xa] sm:$0x3] }
  0x87   : > { %1053 = vrot.lane.b32.xlu0 %v1052_v3, %s4074_s11  ;;  %v654_v13 = vpack.i.b16 %v653_v7, %v653_v7  ;;  %v662_v17 = vpack.i.b16 %v661_v11, %v661_v11  ;;  %s4092_s11 = smov 112   ;;  %vm278_vm4 = vcmask 590848   ;;  %vm941_vm5 = vcmask 80896  }
  0x88   : > { %v455_v16 = vcombine.low %v441_v8, %v449_v9  ;;  %v670_v18 = vpack.i.b16 %v669_v12, %v669_v12  ;;  %v462_v20 = vrot.slane %v454_v61, %v4168_v19  ;;  %v678_v23 = vpack.i.b16 %v677_v14, %v677_v14  ;;  %279 = vst.msk [vmem:[#allocation2] sm:$0x3] %vm278_vm4, %v4090_v10 }
  0x89   : > { %v659_v22 = vrot.slane %v654_v13, %v4171_v21  ;;  %v667_v25 = vrot.slane %v662_v17, %v4171_v21  ;;  %v4097_v8 = vmov 839922192   ;;  %vm474_vm6 = vcmask 7168  }
  0x8a   : > { %v469_v24 = vrot.slane %v455_v16, %v4168_v19  ;;  %v675_v26 = vrot.slane %v670_v18, %v4171_v21  ;;  %v683_v27 = vrot.slane %v678_v23, %v4171_v21  ;;  %v240_v9 = vunpack.c.l.s4 %v4097_v8  ;;  %v3158_v23 = vld [vmem:[#allocation2 + $0xa] sm:$0x3]  ;;  %v321_v8 = vld [vmem:[%s5341_s3] sm:$0x11] }
  0x8b   : > { %v688_v31 = vcombine.low %v659_v22, %v667_v25  ;;  %vm1174_vm7 = vcmask 138240   ;;  %vm312_vm10 = vcmask 1043458   ;;  %vm314_vm11 = vcmask 1045508  }
  0x8c   : > { %v470_v30 = vcombine.low %v462_v20, %v469_v24  ;;  %v689_v33 = vcombine.low %v675_v26, %v683_v27  ;;  %v241_v14 = vunpack.c.0.s8 %v240_v9  ;;  %v2471_v20 = vld [vmem:[#allocation2 + $0xa] sm:$0x3]  ;;  %v322_v9 = vld [vmem:[%s5341_s3 + $0x8] sm:$0x11]  ;;  %vm313_vm12 = vmor %vm312_vm10, %vm280_vm1  ;;  %vm316_vm14 = vcmask 1047558  }
  0x8d   : > { %v4498_v29 = vpop.permute.xlu1 %3108  ;;  %v696_v34 = vrot.slane %v688_v31, %v4168_v19  ;;  %vm315_vm13 = vmor %vm314_vm11, %vm313_vm12  ;;  %vm308_vm1 = vcmask 596992   ;;  %vm590_vm2 = vcmask 15360   ;;  %vm708_vm3 = vcmask 64512  }
  0x8e   : > { %v3110_v32 = vrot.slane %v4498_v29, 6  ;;  %471 = vrot.lane.b32.xlu0 %v470_v30, %s4081_s30  ;;  %v703_v36 = vrot.slane %v689_v33, %v4168_v19  ;;  %s4095_s30 = smov 120   ;;  %v244_v18 = vsub.s32 %v241_v14, %v4150_v5  ;;  %vm317_vm15 = vmor %vm316_vm14, %vm315_vm13  ;;  %vm2219_vm10 = vcmask 662528  }
  0x8f   : > { %vm2337_vm11 = vcmask 670720   ;;  %vm2104_vm12 = vcmask 654336   ;;  %vm1407_vm13 = vcmask 523264   ;;  %vm1521_vm14 = vcmask 531456  }
  0x90   : > { %v3115_v35 = vmul.bf16 %v3110_v32, %v3046_v28  ;;  %v704_v39 = vcombine.low %v696_v34, %v703_v36  ;;  %v4064_v36 = vld [vmem:[%s4165_s28 + $0x8] sm:$0xff] }
  0x92   : > { %v3139_v38 = vrot.slane %v3115_v35, %v4168_v19  ;;  %705 = vrot.lane.b32.xlu0 %v704_v39, %s4077_s29  ;;  %s4094_s29 = smov 126   ;;  %v4063_v35 = vld [vmem:[%s4165_s28] sm:$0xff]  ;;  %s4100_s28 = smov 127  }
  0x94   : > { %v4507_v41 = vpop.permute.xlu1 %3337  ;;  %3144 = vrot.lane.b32.xlu1 %v3139_v38, %s4092_s11 }
  0x95   : > { %v3339_v42 = vrot.slane %v4507_v41, 6 }
  0x97   : > { %v3344_v43 = vmul.bf16 %v3339_v42, %v3275_v40 }
  0x99   : > { %v4514_v45 = vpop.permute.xlu1 %2650  ;;  %v3368_v46 = vrot.slane %v3344_v43, %v4168_v19 }
  0x9a   : > { %v2652_v47 = vrot.slane %v4514_v45, 6 }
  0x9b   : > { %3373 = vrot.lane.b32.xlu1 %v3368_v46, %s4093_s23 }
  0x9c   : > { %v2657_v48 = vmul.bf16 %v2652_v47, %v2588_v44 }
  0x9e   : > { %v4521_v50 = vpop.permute.xlu1 %2766  ;;  %v2681_v51 = vrot.slane %v2657_v48, %v4168_v19 }
  0x9f   : > { %v2768_v52 = vrot.slane %v4521_v50, 6 }
  0xa0   : > { %2686 = vrot.lane.b32.xlu0 %v2681_v51, %s4094_s29 }
  0xa1   : > { %v2773_v53 = vmul.bf16 %v2768_v52, %v2700_v49 }
  0xa2   : > { %v4528_v55 = vpop.permute.xlu1 %2879 }
  0xa3   : > { %v2791_v56 = vcombine.low %v2773_v53, %v2773_v53  ;;  %v216_v37 = vpop.xlane.xlu0 %215  ;;  %v2881_v57 = vrot.slane %v4528_v55, 6 }
  0xa4   : > { %v217_v58 = vmul.f32 0.001953125, %v216_v37 }
  0xa5   : > { %v2798_v59 = vrot.slane %v2791_v56, %v4168_v19  ;;  %v2886_v60 = vmul.bf16 %v2881_v57, %v2817_v54 }
  0xa6   : > { %v236_v0 = vmul.f32 %v217_v58, %v217_v58  ;;  %v245_v27 = vrot.slane %v217_v58, %v244_v18 }
  0xa7   : > { %2803 = vrot.lane.b32.xlu1 %v2798_v59, %s4095_s30  ;;  %v234_v62 = vpop.xlane.xlu0 %233  ;;  %v2910_v63 = vrot.slane %v2886_v60, %v4168_v19 }
  0xa8   : > { %v235_v1 = vmul.f32 0.001953125, %v234_v62  ;;  %v2996_v3 = vpop.permute.xlu1 %2995  ;;  %v247_v5 = vsub.f32 %v4063_v35, %v245_v27  ;;  %v248_v38 = vsub.f32 %v4064_v36, %v245_v27 }
  0xa9   : > { %v2997_v4 = vrot.slane %v2996_v3, 6  ;;  %2915 = vrot.lane.b32.xlu0 %v2910_v63, %s4096_s12 }
  0xaa   : > { %v237_v6 = vsub.f32 %v235_v1, %v236_v0 }
  0xab   : > { %v4540_v7 = vsel %vm941_vm5, %v2997_v4, %v2996_v3  ;;  %v3002_v10 = vmul.bf16 %v2997_v4, %v2929_v2 }
  0xac   : > { %v249_v11 = vadd.f32 1e-05, %v237_v6  ;;  %v4542_v12 = vpop.permute.xlu1 %2216 }
  0xad   : > { %v3020_v61 = vcombine.low %v3002_v10, %v3002_v10 }
  0xae   : > { %4061 = vrsqrt.f32 %v249_v11  ;;  %v2387_v11 = vld [vmem:[%s5341_s3 + $0x20] sm:$0x22] }
  0xaf   : > { %v3027_v13 = vrot.slane %v3020_v61, %v4168_v19  ;;  %v2388_v61 = vld [vmem:[%s5341_s3 + $0x28] sm:$0x22] }
  0xb1   : > { %3032 = vrot.lane.b32.xlu1 %v3027_v13, %s4098_s13 }
  0xb2   : > { %v2538_v16 = vpop.permute.xlu1 %2537 }
  0xb3   : > { %v2539_v17 = vrot.slane %v2538_v16, 6 }
  0xb5   : > { %v4548_v22 = vsel %vm474_vm6, %v2539_v17, %v2538_v16  ;;  %v2544_v25 = vmul.bf16 %v2539_v17, %v2471_v20  ;;  %v3719_v16 = vcombine.low %v321_v8, %v321_v8  ;;  %v3720_v17 = vcombine.high %v321_v8, %v321_v8 }
  0xb6   : > { %v3225_v24 = vpop.permute.xlu0 %3224  ;;  %v3722_v20 = vcombine.high %v322_v9, %v322_v9 }
  0xb7   : > { %v3226_v26 = vrot.slane %v3225_v24, 6  ;;  %v2562_v33 = vcombine.low %v2544_v25, %v2544_v25  ;;  %v3795_v25 = vcombine.low %v2388_v61, %v2388_v61 }
  0xb9   : > { %v4551_v28 = vsel %vm1174_vm7, %v3226_v26, %v3225_v24  ;;  %v3231_v30 = vmul.bf16 %v3226_v26, %v3158_v23  ;;  %v2569_v46 = vrot.slane %v2562_v33, %v4168_v19  ;;  %v3793_v23 = vcombine.low %v2387_v11, %v2387_v11 }
  0xba   : > { %v3794_v24 = vcombine.high %v2387_v11, %v2387_v11  ;;  %v3796_v26 = vcombine.high %v2388_v61, %v2388_v61  ;;  %v2414_v36 = vpack.i.b16 %v3795_v25, %v3795_v25 }
  0xbb   : > { %v4062_v31 = vpop.eup %4061  ;;  %v3249_v34 = vcombine.low %v3231_v30, %v3231_v30  ;;  %v4562_v63 = vpop.permute.xlu1 %1869  ;;  %v334_v30 = vpack.i.b16 %v3719_v16, %v3719_v16  ;;  %v2400_v35 = vpack.i.b16 %v3793_v23, %v3793_v23 }
  0xbc   : > { %v258_v39 = vrot.slane %v4062_v31, %v244_v18  ;;  %v3721_v18 = vcombine.low %v322_v9, %v322_v9  ;;  %v341_v31 = vpack.i.b16 %v3720_v17, %v3720_v17 }
  0xbd   : > { %v3256_v40 = vrot.slane %v3249_v34, %v4168_v19  ;;  %v355_v34 = vpack.i.b16 %v3722_v20, %v3722_v20  ;;  %v2218_v20 = vrot.slane %v4542_v12, 6 }
  0xbe   : > { %v260_v43 = vmul.f32 %v258_v39, %v247_v5  ;;  %v261_v44 = vmul.f32 %v258_v39, %v248_v38  ;;  %v348_v33 = vpack.i.b16 %v3721_v18, %v3721_v18  ;;  %v2407_v5 = vpack.i.b16 %v3794_v24, %v3794_v24 }
  0xbf   : > { %3261 = vrot.lane.b32.xlu0 %v3256_v40, %s4099_s19  ;;  %v2421_v38 = vpack.i.b16 %v3796_v26, %v3796_v26 }
  0xc0   : > { %vm262_vm8 = vcmp.ge.f32.partialorder %v260_v43, 0.0  ;;  %vm263_vm9 = vcmp.ge.f32.partialorder %v261_v44, 0.0  ;;  %v264_v48 = vmul.f32 0.2, %v260_v43  ;;  %v265_v49 = vmul.f32 0.2, %v261_v44 }
  0xc2   : > { %v266_v51 = vsel %vm262_vm8, %v260_v43, %v264_v48  ;;  %v267_v53 = vsel %vm263_vm9, %v261_v44, %v265_v49  ;;  %v4592_v14 = vpop.permute.xlu0 %2334  ;;  %v339_v43 = vrot.slane %v334_v30, %v4160_v15  ;;  %v346_v44 = vrot.slane %v341_v31, %v4160_v15 }
  0xc3   : > { %v270_v54 = vcombine.high %v266_v51, %v266_v51  ;;  %v271_v56 = vcombine.high %v267_v53, %v267_v53  ;;  %2574 = vrot.lane.b32.xlu0 %v2569_v46, %s4100_s28  ;;  %v353_v46 = vrot.slane %v348_v33, %v4160_v15  ;;  %v360_v48 = vrot.slane %v355_v34, %v4160_v15 }
  0xc4   : > { %v2405_v49 = vrot.slane %v2400_v35, %v4171_v21  ;;  %vm1639_vm8 = vcmask 539648   ;;  %vm1056_vm9 = vcmask 130048  }
  0xc5   : > { %v3717_v37 = vpack.c.bf16 %v270_v54, %v266_v51  ;;  %v3718_v58 = vpack.c.bf16 %v271_v56, %v267_v53  ;;  %v2412_v51 = vrot.slane %v2407_v5, %v4171_v21  ;;  %v2419_v53 = vrot.slane %v2414_v36, %v4171_v21 }
  0xc6   : > { %v4564_v0 = vpop.permute.xlu1 %2101  ;;  %v2426_v54 = vrot.slane %v2421_v38, %v4171_v21 }
  0xc7   : > { %v296_v59 = vrot.slane %v3717_v37, %v4168_v19  ;;  %v303_v60 = vrot.slane %v3718_v58, %v4168_v19  ;;  %v365_v37 = vcombine.low %v339_v43, %v346_v44  ;;  %v366_v58 = vcombine.low %v353_v46, %v360_v48 }
  0xc9   : > { %v304_v62 = vcombine.low %v296_v59, %v303_v60  ;;  %v4596_v39 = vpop.permute.xlu0 %1751  ;;  %v2431_v59 = vcombine.low %v2405_v49, %v2412_v51  ;;  %v2432_v60 = vcombine.low %v2419_v53, %v2426_v54  ;;  %v373_v9 = vrot.slane %v365_v37, %v4168_v19 }
  0xca   : > { %v380_v21 = vrot.slane %v366_v58, %v4168_v19  ;;  %v1753_v23 = vrot.slane %v4596_v39, 6  ;;  %v2653_v37 = vsel %vm590_vm2, %v2652_v47, %v4514_v45  ;;  %v2769_v45 = vsel %vm708_vm3, %v2768_v52, %v4521_v50 }
  0xcb   : > { %305 = vrot.lane.b32.xlu1 %v304_v62, %s4083_s20  ;;  %v2439_v11 = vrot.slane %v2431_v59, %v4168_v19  ;;  %v2446_v61 = vrot.slane %v2432_v60, %v4168_v19 }
  0xcc   : > { %v381_v17 = vcombine.low %v373_v9, %v380_v21 }
  0xcd   : > { %v2447_v18 = vcombine.low %v2439_v11, %v2446_v61 }
  0xd0   : > { %v4566_v1 = vpop.permute.xlu1 %1404 }
  0xd3   : > { %v4609_v56 = vpop.permute.xlu0 %1983 }
  0xd4   : > { %v1985_v24 = vrot.slane %v4609_v56, 6 }
  0xd9   : > { %v4568_v2 = vpop.permute.xlu1 %1636 }
  0xda   : > { %v1638_v52 = vrot.slane %v4568_v2, 6 }
  0xdc   : > { %v4617_v16 = vpop.permute.xlu0 %1286 }
  0xdd   : > { %v1288_v43 = vrot.slane %v4617_v16, 6 }
  0xe3   : > { %v4570_v3 = vpop.permute.xlu1 %938 }
  0xe6   : > { %v4622_v31 = vpop.permute.xlu0 %1518 }
  0xe7   : > { %v1520_v58 = vrot.slane %v4622_v31, 6 }
  0xee   : > { %v4572_v4 = vpop.permute.xlu1 %1171 }
  0xf0   : > { %v4655_v59 = vpop.permute.xlu0 %820 }
  0xf1   : > { %v822_v47 = vrot.slane %v4655_v59, 6 }
  0xf5   : > { %v4574_v6 = vpop.permute.xlu1 %587 }
  0xf6   : > { %v589_v33 = vrot.slane %v4574_v6, 6 }
 0x106   : > { %v4576_v10 = vpop.permute.xlu1 %3144 }
 0x10d   : > { %v4590_v13 = vpop.permute.xlu1 %3373 }
 0x119   : > { %v4594_v27 = vpop.permute.xlu1 %2803 }
 0x123   : > { %v4598_v40 = vpop.permute.xlu1 %3032 }
 0x13d   : > { %v306_v62 = vpop.permute.xlu1 %305 }
 0x13e   : > { %v307_v8 = vrot.slane %v306_v62, 6 }
 0x140   : > { %v309_v15 = vsel %vm308_vm1, %v307_v8, %v306_v62  ;;  %319 = vst.msk [vmem:[#allocation2 + $0x8] sm:$0x3] %vm278_vm4, %v307_v8  ;;  %vm823_vm4 = vcmask 72704  }
 0x141   : > { %318 = vst.msk [vmem:[#allocation2] sm:$0xff] %vm317_vm15, %v309_v15  ;;  %v2882_v50 = vsel %vm823_vm4, %v2881_v57, %v4528_v55  ;;  %v1640_v55 = vsel %vm1639_vm8, %v1638_v52, %v4568_v2  ;;  %v940_v57 = vrot.slane %v4570_v3, 6  ;;  %vm749_vm15 = vcmask 982016  }
 0x142   : > { %vm2145_vm8 = vcmask 392192  }
 0x147   : > { %v2154_v25 = vld [vmem:[#allocation2 + $0x8] sm:$0x3] }
 0x148   : > { %v1689_v26 = vld [vmem:[#allocation2 + $0x8] sm:$0x3]  ;;  %v4625_v34 = vld [vmem:[#allocation2] sm:$0xff]  ;;  %v2224_v5 = vmul.bf16 %v2218_v20, %v2154_v25  ;;  %v4679_v25 = vpop.permute.xlu0 %1053 }
 0x149   : > { %v525_v30 = vld [vmem:[#allocation2 + $0x8] sm:$0x3]  ;;  %v1759_v36 = vmul.bf16 %v1753_v23, %v1689_v26  ;;  %v4635_v44 = vmul.bf16 %v381_v17, %v4625_v34  ;;  %v1055_v26 = vrot.slane %v4679_v25, 6 }
 0x14a   : > { %v4627_v35 = vld [vmem:[#allocation2 + $0x2] sm:$0xff]  ;;  %v2248_v48 = vrot.slane %v2224_v5, %v4168_v19  ;;  %v595_v51 = vmul.bf16 %v589_v33, %v525_v30 }
 0x14b   : > { %v1921_v38 = vld [vmem:[#allocation2 + $0x8] sm:$0x3]  ;;  %v4638_v46 = vmul.bf16 %v2447_v18, %v4627_v35  ;;  %v1783_v49 = vrot.slane %v1759_v36, %v4168_v19  ;;  %3723 = vst.sshfl [vmem:[#allocation3] sm:$0xf pattern:$0x76325410] %v4635_v44  ;;  %v4660_v8 = vmul.bf16 %v2653_v37, %v4627_v35  ;;  %v4675_v61 = vmul.bf16 %v2769_v45, %v4627_v35 }
 0x14c   : > { %v1991_v53 = vmul.bf16 %v1985_v24, %v1921_v38  ;;  %v1224_v54 = vld [vmem:[#allocation2 + $0x8] sm:$0x3]  ;;  %2253 = vrot.lane.b32.xlu0 %v2248_v48, %s4101_s26  ;;  %v619_v60 = vrot.slane %v595_v51, %v4168_v19  ;;  %v4693_v36 = vmul.bf16 %v2882_v50, %v4627_v35  ;;  %v4713_v37 = vmul.bf16 %v1640_v55, %v4625_v34 }
 0x14d   : > { %3797 = vst.sshfl [vmem:[#allocation3 + $0x90] sm:$0xf pattern:$0x76325410] %v4638_v46  ;;  %1788 = vrot.lane.b32.xlu1 %v1783_v49, %s4102_s5  ;;  %v1294_v15 = vmul.bf16 %v1288_v43, %v1224_v54  ;;  %v1456_v9 = vld [vmem:[#allocation2 + $0x8] sm:$0x3]  ;;  %v2667_v21 = vrot.slane %v4660_v8, %v4168_v19  ;;  %v2790_v30 = vrot.slane %v4675_v61, %v4168_v19 }
 0x14e   : > { %v2015_v62 = vrot.slane %v1991_v53, %v4168_v19  ;;  %v1526_v17 = vmul.bf16 %v1520_v58, %v1456_v9  ;;  %v758_v18 = vld [vmem:[#allocation2 + $0x8] sm:$0x3]  ;;  %v2896_v49 = vrot.slane %v4693_v36, %v4168_v19  ;;  %v4708_v53 = vmul.bf16 %v4540_v7, %v4627_v35 }
 0x14f   : > { %v1318_v11 = vrot.slane %v1294_v15, %v4168_v19  ;;  %v828_v38 = vmul.bf16 %v822_v47, %v758_v18  ;;  %v991_v48 = vld [vmem:[#allocation2 + $0x8] sm:$0x3]  ;;  %v3111_v7 = vsel %vm1056_vm9, %v3110_v32, %v4498_v29  ;;  %v2336_v15 = vrot.slane %v4592_v14, 6 }
 0x150   : > { %624 = vrot.lane.b32.xlu0 %v619_v60, %s4094_s29  ;;  %v1550_v5 = vrot.slane %v1526_v17, %v4168_v19  ;;  %v1061_v54 = vmul.bf16 %v1055_v26, %v991_v48  ;;  %v2220_v60 = vsel %vm2219_vm10, %v2218_v20, %v4542_v12  ;;  %v942_v9 = vsel %vm941_vm5, %v940_v57, %v4570_v3  ;;  %v4733_v20 = vpop.permute.xlu0 %471 }
 0x151   : > { %2020 = vrot.lane.b32.xlu1 %v2015_v62, %s4103_s6  ;;  %v852_v51 = vrot.slane %v828_v38, %v4168_v19  ;;  %v1173_v62 = vrot.slane %v4572_v4, 6  ;;  %v4731_v12 = vmul.bf16 %v2220_v60, %v4625_v34  ;;  %v3019_v45 = vrot.slane %v4708_v53, %v4168_v19 }
 0x152   : > { %v4742_v29 = vmul.bf16 %v942_v9, %v4625_v34  ;;  %v473_v32 = vrot.slane %v4733_v20, 6  ;;  %vm1289_vm5 = vcmask 146432   ;;  %v2338_v18 = vsel %vm2337_vm11, %v2336_v15, %v4592_v14 }
 0x153   : > { %v1175_v17 = vsel %vm1174_vm7, %v1173_v62, %v4572_v4  ;;  %v4763_v38 = vmul.bf16 %v2338_v18, %v4625_v34  ;;  %v4767_v48 = vmul.bf16 %v4551_v28, %v4627_v35  ;;  %v1871_v9 = vrot.slane %v4562_v63, 6 }
 0x154   : > { %2682 = vrot.lane.b32.xlu0 %v2667_v21, %s4094_s29  ;;  %v1085_v21 = vrot.slane %v1061_v54, %v4168_v19  ;;  %v4756_v50 = vmul.bf16 %v1175_v17, %v4625_v34  ;;  %v475_v55 = vsel %vm474_vm6, %v473_v32, %v4733_v20  ;;  %vm1754_vm6 = vcmask 588800  }
 0x155   : > { %1323 = vrot.lane.b32.xlu1 %v1318_v11, %s4093_s23  ;;  %v4739_v11 = vmul.bf16 %v3111_v7, %v4627_v35  ;;  %v2359_v28 = vrot.slane %v4763_v38, %v4168_v19  ;;  %v3248_v54 = vrot.slane %v4767_v48, %v4168_v19  ;;  %v4787_v60 = vmul.bf16 %v475_v55, %v4625_v34  ;;  %v1803_v7 = vld [vmem:[#allocation2 + $0x8] sm:$0x3] }
 0x156   : > { %v1876_v18 = vmul.bf16 %v1871_v9, %v1803_v7  ;;  %v1406_v7 = vrot.slane %v4566_v1, 6  ;;  %vm1986_vm7 = vcmask 605184   ;;  %v1522_v4 = vsel %vm1521_vm14, %v1520_v58, %v4622_v31 }
 0x157   : > { %vm1680_vm10 = vcmask 506880   ;;  %vm1329_vm11 = vcmask 900096   ;;  %vm863_vm14 = vcmask 973824  }
 0x158   : > { %2801 = vrot.lane.b32.xlu0 %v2790_v30, %s4095_s30  ;;  %v2234_v30 = vrot.slane %v4731_v12, %v4168_v19  ;;  %v1408_v3 = vsel %vm1407_vm13, %v1406_v7, %v4566_v1 }
 0x159   : > { %1555 = vrot.lane.b32.xlu1 %v1550_v5, %s4104_s10  ;;  %v3125_v5 = vrot.slane %v4739_v11, %v4168_v19 }
 0x15c   : > { %2911 = vrot.lane.b32.xlu0 %v2896_v49, %s4096_s12  ;;  %v3340_v49 = vsel %vm1289_vm5, %v3339_v42, %v4507_v41  ;;  %v591_v41 = vsel %vm590_vm2, %v589_v33, %v4574_v6  ;;  %v1755_v6 = vsel %vm1754_vm6, %v1753_v23, %v4596_v39  ;;  %v1894_v39 = vcombine.low %v1876_v18, %v1876_v18 }
 0x15d   : > { %857 = vrot.lane.b32.xlu1 %v852_v51, %s4096_s12  ;;  %v4780_v51 = vmul.bf16 %v3340_v49, %v4627_v35  ;;  %v4805_v17 = vmul.bf16 %v591_v41, %v4625_v34  ;;  %v4814_v33 = vmul.bf16 %v1755_v6, %v4625_v34  ;;  %vm1215_vm2 = vcmask 908288  }
 0x15e   : > { %v1901_v41 = vrot.slane %v1894_v39, %v4168_v19  ;;  %vm2026_vm6 = vcmask 441344  }
 0x15f   : > { %v3354_v42 = vrot.slane %v4780_v51, %v4168_v19  ;;  %v605_v49 = vrot.slane %v4805_v17, %v4168_v19 }
 0x160   : > { %3030 = vrot.lane.b32.xlu0 %v3019_v45, %s4098_s13  ;;  %v496_v45 = vrot.slane %v4787_v60, %v4168_v19 }
 0x161   : > { %1090 = vrot.lane.b32.xlu1 %v1085_v21, %s4092_s11  ;;  %v4802_v21 = vmul.bf16 %v4548_v22, %v4627_v35  ;;  %v2451_v22 = vcombine.high %v4638_v46, %v4638_v46  ;;  %v385_v35 = vcombine.high %v4635_v44, %v4635_v44  ;;  %v1769_v46 = vrot.slane %v4814_v33, %v4168_v19 }
 0x163   : > { %v2561_v55 = vrot.slane %v4802_v21, %v4168_v19  ;;  %3798 = vst.sshfl [vmem:[#allocation3 + $0x98] sm:$0xf pattern:$0x76325410] %v2451_v22 }
 0x164   : > { %2249 = vrot.lane.b32.xlu0 %v2234_v30, %s4101_s26  ;;  %v2035_v30 = vld [vmem:[#allocation2 + $0x8] sm:$0x3]  ;;  %3724 = vst.sshfl [vmem:[#allocation3 + $0x8] sm:$0xf pattern:$0x76325410] %v385_v35 }
 0x165   : > { %3140 = vrot.lane.b32.xlu1 %v3125_v5, %s4092_s11  ;;  %v2103_v5 = vrot.slane %v4564_v0, 6 }
 0x167   : > { %v2109_v23 = vmul.bf16 %v2103_v5, %v2035_v30 }
 0x168   : > { %2370 = vrot.lane.b32.xlu0 %v2359_v28, %s4105_s8  ;;  %v1338_v28 = vld [vmem:[#allocation2 + $0x8] sm:$0x3] }
 0x169   : > { %3259 = vrot.lane.b32.xlu1 %v3248_v54, %s4099_s19  ;;  %v1872_v54 = vsel %vm308_vm1, %v1871_v9, %v4562_v63  ;;  %v1987_v63 = vsel %vm1986_vm7, %v1985_v24, %v4609_v56  ;;  %v1570_v9 = vld [vmem:[#allocation2 + $0x8] sm:$0x3]  ;;  %v2105_v24 = vsel %vm2104_vm12, %v2103_v5, %v4564_v0  ;;  %vm982_vm1 = vcmask 965632  }
 0x16a   : > { %v4830_v44 = vmul.bf16 %v1872_v54, %v4625_v34  ;;  %v4844_v6 = vmul.bf16 %v1987_v63, %v4625_v34  ;;  %v1644_v35 = vmul.bf16 %v1638_v52, %v1570_v9  ;;  %v872_v56 = vld [vmem:[#allocation2 + $0x8] sm:$0x3]  ;;  %v3234_v63 = vcombine.low %v4767_v48, %v4767_v48 }
 0x16b   : > { %v946_v0 = vmul.bf16 %v940_v57, %v872_v56  ;;  %v1105_v5 = vld [vmem:[#allocation2 + $0x8] sm:$0x3]  ;;  %v824_v9 = vsel %vm823_vm4, %v822_v47, %v4655_v59  ;;  %v3347_v48 = vcombine.high %v4780_v51, %v4780_v51  ;;  %v963_v51 = vrot.slane %v4742_v29, %v4168_v19 }
 0x16c   : > { %507 = vrot.lane.b32.xlu0 %v496_v45, %s4100_s28  ;;  %v1412_v45 = vmul.bf16 %v1406_v7, %v1338_v28  ;;  %v1893_v18 = vrot.slane %v4830_v44, %v4168_v19  ;;  %v2001_v2 = vrot.slane %v4844_v6, %v4168_v19  ;;  %v1662_v39 = vcombine.low %v1644_v35, %v1644_v35 }
 0x16d   : > { %3369 = vrot.lane.b32.xlu1 %v3354_v42, %s4093_s23  ;;  %v2127_v42 = vcombine.low %v2109_v23, %v2109_v23  ;;  %v964_v28 = vcombine.low %v946_v0, %v946_v0  ;;  %v1179_v54 = vmul.bf16 %v1173_v62, %v1105_v5  ;;  %v4892_v7 = vmul.bf16 %v1522_v4, %v4625_v34 }
 0x16e   : > { %v1430_v22 = vcombine.low %v1412_v45, %v1412_v45  ;;  %v1669_v23 = vrot.slane %v1662_v39, %v4168_v19  ;;  %v3118_v45 = vcombine.high %v4739_v11, %v4739_v11  ;;  %v1661_v11 = vrot.slane %v4713_v37, %v4168_v19  ;;  %v405_v39 = vld [vmem:[#allocation2 + $0x8] sm:$0x3] }
 0x16f   : > { %v2134_v30 = vrot.slane %v2127_v42, %v4168_v19  ;;  %v1197_v42 = vcombine.low %v1179_v54, %v1179_v54  ;;  %v1536_v31 = vrot.slane %v4892_v7, %v4168_v19  ;;  %v3361_v47 = vrot.slane %v3347_v48, %v4168_v19 }
 0x170   : > { %620 = vrot.lane.b32.xlu0 %v605_v49, %s4094_s29  ;;  %v4856_v49 = vmul.bf16 %v2105_v24, %v4625_v34  ;;  %v1437_v52 = vrot.slane %v1430_v22, %v4168_v19  ;;  %v3132_v58 = vrot.slane %v3118_v45, %v4168_v19  ;;  %v2547_v22 = vcombine.low %v4802_v21, %v4802_v21 }
 0x171   : > { %2572 = vrot.lane.b32.xlu1 %v2561_v55, %s4100_s28  ;;  %v1290_v55 = vsel %vm1289_vm5, %v1288_v43, %v4617_v16  ;;  %v1204_v62 = vrot.slane %v1197_v42, %v4168_v19  ;;  %v1057_v35 = vsel %vm1056_vm9, %v1055_v26, %v4679_v25  ;;  %v1762_v21 = vcombine.high %v4814_v33, %v4814_v33 }
 0x172   : > { %v4866_v16 = vmul.bf16 %v1290_v55, %v4625_v34  ;;  %v2126_v43 = vrot.slane %v4856_v49, %v4168_v19  ;;  %v2554_v56 = vrot.slane %v2547_v22, %v4168_v19  ;;  %v4934_v24 = vmul.bf16 %v1057_v35, %v4625_v34  ;;  %v2268_v55 = vld [vmem:[#allocation2 + $0x8] sm:$0x3] }
 0x173   : > { %v1776_v26 = vrot.slane %v1762_v21, %v4168_v19  ;;  %v1994_v33 = vcombine.high %v4844_v6, %v4844_v6  ;;  %v1196_v0 = vrot.slane %v4756_v50, %v4168_v19  ;;  %v2112_v6 = vcombine.low %v4856_v49, %v4856_v49 }
 0x174   : > { %1906 = vrot.lane.b32.xlu0 %v1901_v41, %s4106_s7  ;;  %v1304_v57 = vrot.slane %v4866_v16, %v4168_v19  ;;  %v4881_v41 = vmul.bf16 %v1408_v3, %v4625_v34  ;;  %v1071_v25 = vrot.slane %v4934_v24, %v4168_v19  ;;  %v2660_v54 = vcombine.high %v4660_v8, %v4660_v8 }
 0x175   : > { %1784 = vrot.lane.b32.xlu1 %v1769_v46, %s4102_s5  ;;  %v971_v46 = vrot.slane %v964_v28, %v4168_v19  ;;  %v4964_v28 = vpop.permute.xlu0 %705  ;;  %v1297_v3 = vcombine.high %v4866_v16, %v4866_v16  ;;  %vm1912_vm4 = vcmask 449536   ;;  %vm1096_vm9 = vcmask 916480  }
 0x176   : > { %v1429_v1 = vrot.slane %v4881_v41, %v4168_v19  ;;  %v2674_v49 = vrot.slane %v2660_v54, %v4168_v19  ;;  %v1415_v42 = vcombine.low %v4881_v41, %v4881_v41  ;;  %vm1794_vm5 = vcmask 457728  }
 0x177   : > { %vm2378_vm7 = vcmask 375808   ;;  %vm630_vm12 = vcmask 1031168  }
 0x178   : > { %2139 = vrot.lane.b32.xlu0 %v2134_v30, %s4107_s9  ;;  %v4913_v30 = vmul.bf16 %v824_v9, %v4625_v34  ;;  %v1422_v16 = vrot.slane %v1415_v42, %v4168_v19  ;;  %v2227_v9 = vcombine.high %v4731_v12, %v4731_v12  ;;  %v707_v12 = vrot.slane %v4964_v28, 6 }
 0x179   : > { %1904 = vrot.lane.b32.xlu1 %v1893_v18, %s4106_s7  ;;  %v3241_v18 = vrot.slane %v3234_v63, %v4168_v19  ;;  %v4980_v4 = vpop.permute.xlu0 %2686 }
 0x17a   : > { %v838_v59 = vrot.slane %v4913_v30, %v4168_v19 }
 0x17c   : > { %1442 = vrot.lane.b32.xlu0 %v1437_v52, %s4087_s27  ;;  %v2342_v52 = vmul.bf16 %v2336_v15, %v2268_v55  ;;  %v2008_v15 = vrot.slane %v1994_v33, %v4168_v19 }
 0x17d   : > { %2016 = vrot.lane.b32.xlu1 %v2001_v2, %s4103_s6  ;;  %v1879_v2 = vcombine.low %v4830_v44, %v4830_v44  ;;  %v479_v44 = vmul.bf16 %v473_v32, %v405_v39  ;;  %v2119_v32 = vrot.slane %v2112_v6, %v4168_v19 }
 0x17f   : > { %v1886_v5 = vrot.slane %v1879_v2, %v4168_v19  ;;  %v639_v2 = vld [vmem:[#allocation2 + $0x8] sm:$0x3] }
 0x180   : > { %1674 = vrot.lane.b32.xlu0 %v1669_v23, %s4108_s14  ;;  %v497_v23 = vcombine.low %v479_v44, %v479_v44 }
 0x181   : > { %2137 = vrot.lane.b32.xlu1 %v2126_v43, %s4107_s9  ;;  %v2360_v43 = vcombine.low %v2342_v52, %v2342_v52 }
 0x182   : > { %v504_v20 = vrot.slane %v497_v23, %v4168_v19 }
 0x183   : > { %v2367_v14 = vrot.slane %v2360_v43, %v4168_v19 }
 0x184   : > { %976 = vrot.lane.b32.xlu0 %v971_v46, %s4098_s13  ;;  %v2776_v46 = vcombine.low %v4675_v61, %v4675_v61  ;;  %v4990_v61 = vpop.permute.xlu0 %2915 }
 0x185   : > { %1319 = vrot.lane.b32.xlu1 %v1304_v57, %s4093_s23  ;;  %v1311_v57 = vrot.slane %v1297_v3, %v4168_v19 }
 0x186   : > { %v2783_v8 = vrot.slane %v2776_v46, %v4168_v19  ;;  %v3417_v46 = vld [vmem:[%s5340_s2] sm:$0xff] }
 0x188   : > { %1209 = vrot.lane.b32.xlu0 %v1204_v62, %s4099_s19  ;;  %v1529_v62 = vcombine.high %v4892_v7, %v4892_v7 }
 0x189   : > { %1440 = vrot.lane.b32.xlu1 %v1429_v1, %s4087_s27  ;;  %v2889_v1 = vcombine.high %v4693_v36, %v4693_v36  ;;  %v5000_v36 = vpop.permute.xlu0 %3261 }
 0x18a   : > { %v1543_v45 = vrot.slane %v1529_v62, %v4168_v19  ;;  %v3265_v62 = vrot.slane %v5000_v36, 4 }
 0x18b   : > { %v2903_v41 = vrot.slane %v2889_v1, %v4168_v19 }
 0x18c   : > { %3142 = vrot.lane.b32.xlu0 %v3132_v58, %s4092_s11  ;;  %v1647_v58 = vcombine.low %v4713_v37, %v4713_v37 }
 0x18d   : > { %1551 = vrot.lane.b32.xlu1 %v1536_v31, %s4104_s10  ;;  %v3005_v31 = vcombine.low %v4708_v53, %v4708_v53  ;;  %v2345_v53 = vcombine.low %v4763_v38, %v4763_v38  ;;  %v5014_v37 = vpop.permute.xlu0 %2574 }
 0x18e   : > { %v1654_v63 = vrot.slane %v1647_v58, %v4168_v19  ;;  %v2578_v36 = vrot.slane %v5014_v37, 4 }
 0x18f   : > { %v3012_v7 = vrot.slane %v3005_v31, %v4168_v19  ;;  %v2352_v22 = vrot.slane %v2345_v53, %v4168_v19 }
 0x190   : > { %3257 = vrot.lane.b32.xlu0 %v3241_v18, %s4099_s19  ;;  %v2241_v18 = vrot.slane %v2227_v9, %v4168_v19 }
 0x191   : > { %1672 = vrot.lane.b32.xlu1 %v1661_v11, %s4108_s14  ;;  %v831_v11 = vcombine.high %v4913_v30, %v4913_v30  ;;  %v482_v30 = vcombine.low %v4787_v60, %v4787_v60  ;;  %v598_v60 = vcombine.high %v4805_v17, %v4805_v17 }
 0x193   : > { %v845_v48 = vrot.slane %v831_v11, %v4168_v19  ;;  %v612_v33 = vrot.slane %v598_v60, %v4168_v19 }
 0x194   : > { %3371 = vrot.lane.b32.xlu0 %v3361_v47, %s4093_s23 }
 0x195   : > { %853 = vrot.lane.b32.xlu1 %v838_v59, %s4096_s12  ;;  %v949_v59 = vcombine.low %v4742_v29, %v4742_v29  ;;  %v1064_v29 = vcombine.high %v4934_v24, %v4934_v24  ;;  %v1182_v24 = vcombine.low %v4756_v50, %v4756_v50 }
 0x197   : > { %v956_v35 = vrot.slane %v949_v59, %v4168_v19  ;;  %v1078_v55 = vrot.slane %v1064_v29, %v4168_v19  ;;  %v1189_v39 = vrot.slane %v1182_v24, %v4168_v19 }
 0x198   : > { %2570 = vrot.lane.b32.xlu0 %v2554_v56, %s4100_s28 }
 0x199   : > { %974 = vrot.lane.b32.xlu1 %v963_v51, %s4098_s13  ;;  %v709_v51 = vsel %vm708_vm3, %v707_v12, %v4964_v28  ;;  %vm516_vm3 = vcmask 1039360  }
 0x19c   : > { %1786 = vrot.lane.b32.xlu0 %v1776_v26, %s4102_s5  ;;  %v712_v26 = vmul.bf16 %v709_v51, %v4625_v34 }
 0x19d   : > { %1086 = vrot.lane.b32.xlu1 %v1071_v25, %s4092_s11  ;;  %v489_v25 = vrot.slane %v482_v30, %v4168_v19 }
 0x19e   : > { %v730_v43 = vrot.slane %v712_v26, %v4168_v19 }
 0x1a0   : > { %1902 = vrot.lane.b32.xlu0 %v1886_v5, %s4106_s7  ;;  %v713_v5 = vmul.bf16 %v707_v12, %v639_v2 }
 0x1a1   : > { %1207 = vrot.lane.b32.xlu1 %v1196_v0, %s4099_s19  ;;  %v716_v0 = vcombine.low %v712_v26, %v712_v26 }
 0x1a3   : > { %v723_v44 = vrot.slane %v716_v0, %v4168_v19 }
 0x1a4   : > { %2018 = vrot.lane.b32.xlu0 %v2008_v15, %s4103_s6  ;;  %v2807_v15 = vrot.slane %v4594_v27, 4 }
 0x1a5   : > { %2372 = vrot.lane.b32.xlu1 %v2367_v14, %s4105_s8  ;;  %v731_v14 = vcombine.low %v713_v5, %v713_v5 }
 0x1a7   : > { %v738_v27 = vrot.slane %v731_v14, %v4168_v19 }
 0x1a8   : > { %2135 = vrot.lane.b32.xlu0 %v2119_v32, %s4107_s9 }
 0x1a9   : > { %509 = vrot.lane.b32.xlu1 %v504_v20, %s4100_s28 }
 0x1ac   : > { %1321 = vrot.lane.b32.xlu0 %v1311_v57, %s4093_s23 }
 0x1ad   : > { %2684 = vrot.lane.b32.xlu1 %v2674_v49, %s4094_s29  ;;  %v3036_v49 = vrot.slane %v4598_v40, 4 }
 0x1b0   : > { %1438 = vrot.lane.b32.xlu0 %v1422_v16, %s4087_s27 }
 0x1b1   : > { %2799 = vrot.lane.b32.xlu1 %v2783_v8, %s4095_s30 }
 0x1b4   : > { %1553 = vrot.lane.b32.xlu0 %v1543_v45, %s4104_s10 }
 0x1b5   : > { %2913 = vrot.lane.b32.xlu1 %v2903_v41, %s4096_s12 }
 0x1b8   : > { %1670 = vrot.lane.b32.xlu0 %v1654_v63, %s4108_s14 }
 0x1b9   : > { %3028 = vrot.lane.b32.xlu1 %v3012_v7, %s4098_s13 }
 0x1bc   : > { %855 = vrot.lane.b32.xlu0 %v845_v48, %s4096_s12 }
 0x1bd   : > { %2251 = vrot.lane.b32.xlu1 %v2241_v18, %s4101_s26 }
 0x1be   : > { %v5027_v38 = vpop.permute.xlu0 %2253 }
 0x1bf   : > { %v5025_v47 = vpop.permute.xlu1 %1788 }
 0x1c0   : > { %972 = vrot.lane.b32.xlu0 %v956_v35, %s4098_s13 }
 0x1c1   : > { %2368 = vrot.lane.b32.xlu1 %v2352_v22, %s4105_s8 }
 0x1c2   : > { %v5041_v21 = vpop.permute.xlu0 %624 }
 0x1c3   : > { %v5039_v56 = vpop.permute.xlu1 %2020 }
 0x1c4   : > { %1088 = vrot.lane.b32.xlu0 %v1078_v55, %s4092_s11 }
 0x1c5   : > { %505 = vrot.lane.b32.xlu1 %v489_v25, %s4100_s28 }
 0x1c6   : > { %v5052_v17 = vpop.permute.xlu0 %2682 }
 0x1c7   : > { %v5050_v52 = vpop.permute.xlu1 %1323 }
 0x1c8   : > { %1205 = vrot.lane.b32.xlu0 %v1189_v39, %s4099_s19 }
 0x1c9   : > { %622 = vrot.lane.b32.xlu1 %v612_v33, %s4094_s29 }
 0x1ca   : > { %v5060_v50 = vpop.permute.xlu0 %2801 }
 0x1cb   : > { %v5058_v34 = vpop.permute.xlu1 %1555  ;;  %v2806_v23 = vrot.slane %v5060_v50, 4 }
 0x1cc   : > { %741 = vrot.lane.b32.xlu0 %v730_v43, %s4095_s30 }
 0x1cd   : > { %739 = vrot.lane.b32.xlu1 %v723_v44, %s4095_s30  ;;  %v2810_v6 = vsel %vm207_vm0, %v2806_v23, %v2807_v15 }
 0x1ce   : > { %v2811_v28 = vsel %vm749_vm15, %v5060_v50, %v2810_v6  ;;  %v5075_v32 = vpop.permute.xlu0 %2911 }
 0x1cf   : > { %v5073_v20 = vpop.permute.xlu1 %857  ;;  %2815 = vst [vmem:[#allocation3 + $0xa8] sm:$0xcc] %v2811_v28 }
 0x1d0   : > { %3420 = vperm.xlu0 %3909, %v3417_v46  }
 0x1d1   : > { %743 = vrot.lane.b32.xlu1 %v738_v27, %s4095_s30  ;;  %s3864_s30 = sshll.u32 %s5344_s16, 5 }
 0x1d2   : > { %v5081_v3 = vpop.permute.xlu0 %3030  ;;  %s197_s19 = scalar_lea.vmem %s5342_s4, %s3864_s30 }
 0x1d3   : > { %v5079_v54 = vpop.permute.xlu1 %1090  ;;  %v3035_v57 = vrot.slane %v5081_v3, 4 }
 0x1d5   : > { %v3039_v19 = vsel %vm207_vm0, %v3035_v57, %v3036_v49  ;;  %v3148_v49 = vrot.slane %v4576_v10, 4 }
 0x1d6   : > { %v3040_v42 = vsel %vm982_vm1, %v5081_v3, %v3039_v19  ;;  %v5093_v16 = vpop.permute.xlu0 %2249 }
 0x1d7   : > { %v3141_v8 = vpop.permute.xlu1 %3140  ;;  %3044 = vst [vmem:[#allocation3 + $0xb8] sm:$0xcc] %v3040_v42 }
 0x1d8   : > { %v3146_v46 = vrot.slane %v3141_v8, 4 }
 0x1da   : > { %v5097_v1 = vpop.permute.xlu0 %2370 }
 0x1db   : > { %v5095_v40 = vpop.permute.xlu1 %3259 }
 0x1dc   : > { %v3264_v41 = vrot.slane %v5095_v40, 4 }
 0x1de   : > { %v3268_v45 = vsel %vm207_vm0, %v3264_v41, %v3265_v62  ;;  %v5108_v7 = vpop.permute.xlu0 %507 }
 0x1df   : > { %v3269_v31 = vsel %vm1215_vm2, %v5095_v40, %v3268_v45  ;;  %v5106_v58 = vpop.permute.xlu1 %3369 }
 0x1e0   : > { %3273 = vst [vmem:[#allocation3 + $0xc8] sm:$0xcc] %v3269_v31 }
 0x1e2   : > { %v5112_v9 = vpop.permute.xlu0 %620 }
 0x1e3   : > { %v5110_v63 = vpop.permute.xlu1 %2572 }
 0x1e4   : > { %v2577_v11 = vrot.slane %v5110_v63, 4 }
 0x1e6   : > { %v2581_v53 = vsel %vm207_vm0, %v2577_v11, %v2578_v36  ;;  %v1907_v59 = vpop.permute.xlu0 %1906 }
 0x1e7   : > { %v2582_v18 = vsel %vm516_vm3, %v5110_v63, %v2581_v53  ;;  %v5121_v48 = vpop.permute.xlu1 %1784  ;;  %v1910_v22 = vrot.slane %v1907_v59, 4 }
 0x1e8   : > { %2586 = vst [vmem:[#allocation3 + $0x98] sm:$0xcc] %v2582_v18 }
 0x1ea   : > { %v2140_v30 = vpop.permute.xlu0 %2139 }
 0x1eb   : > { %v5123_v12 = vpop.permute.xlu1 %1904  ;;  %v2143_v24 = vrot.slane %v2140_v30, 4 }
 0x1ec   : > { %v1909_v37 = vrot.slane %v5123_v12, 4 }
 0x1ee   : > { %v1914_v35 = vsel %vm207_vm0, %v1909_v37, %v1910_v22  ;;  %v1443_v60 = vpop.permute.xlu0 %1442 }
 0x1ef   : > { %v1915_v29 = vsel %vm1912_vm4, %v5123_v12, %v1914_v35  ;;  %v5131_v51 = vpop.permute.xlu1 %2016  ;;  %v1446_v44 = vrot.slane %v1443_v60, 4 }
 0x1f0   : > { %1919 = vst [vmem:[#allocation3 + $0x68] sm:$0xcc] %v1915_v29  ;;  %v2022_v12 = vrot.slane %v5131_v51, 4 }
 0x1f2   : > { %v1675_v25 = vpop.permute.xlu0 %1674 }
 0x1f3   : > { %v5133_v55 = vpop.permute.xlu1 %2137  ;;  %v1678_v18 = vrot.slane %v1675_v25, 4  ;;  %v3377_v25 = vrot.slane %v4590_v13, 4 }
 0x1f4   : > { %v2142_v26 = vrot.slane %v5133_v55, 4 }
 0x1f6   : > { %v2147_v2 = vsel %vm207_vm0, %v2142_v26, %v2143_v24  ;;  %v977_v0 = vpop.permute.xlu0 %976  ;;  %v3375_v24 = vrot.slane %v5106_v58, 4 }
 0x1f7   : > { %v2148_v39 = vsel %vm2145_vm8, %v5133_v55, %v2147_v2  ;;  %v5141_v33 = vpop.permute.xlu1 %1319 }
 0x1f8   : > { %2152 = vst [vmem:[#allocation3 + $0x78] sm:$0xcc] %v2148_v39 }
 0x1fa   : > { %v5145_v43 = vpop.permute.xlu0 %1209 }
 0x1fb   : > { %v5143_v5 = vpop.permute.xlu1 %1440 }
 0x1fc   : > { %v1445_v14 = vrot.slane %v5143_v5, 4 }
 0x1fe   : > { %v1449_v15 = vsel %vm207_vm0, %v1445_v14, %v1446_v44  ;;  %v3143_v27 = vpop.permute.xlu0 %3142 }
 0x1ff   : > { %v1450_v6 = vsel %vm1407_vm13, %v5143_v5, %v1449_v15  ;;  %v5153_v28 = vpop.permute.xlu1 %1551  ;;  %v3147_v19 = vrot.slane %v3143_v27, 4 }
 0x200   : > { %1454 = vst [vmem:[#allocation3 + $0x48] sm:$0xcc] %v1450_v6  ;;  %v1557_v50 = vrot.slane %v5153_v28, 4 }
 0x201   : > { %v3149_v42 = vsel %vm207_vm0, %v3146_v46, %v3147_v19  ;;  %v3151_v62 = vsel %vm207_vm0, %v3147_v19, %v3148_v49 }
 0x202   : > { %v3150_v45 = vsel %vm1096_vm9, %v3141_v8, %v3149_v42  ;;  %v3152_v31 = vsel %vm1096_vm9, %v3143_v27, %v3151_v62  ;;  %v3258_v53 = vpop.permute.xlu0 %3257  ;;  %v980_v27 = vrot.slane %v977_v0, 4 }
 0x203   : > { %v5160_v36 = vpop.permute.xlu1 %1672  ;;  %3155 = vst [vmem:[#allocation3 + $0xc0] sm:$0x33] %v3150_v45  ;;  %3156 = vst [vmem:[#allocation3 + $0xc8] sm:$0x33] %v3152_v31  ;;  %v3263_v59 = vrot.slane %v3258_v53, 4  ;;  %v1792_v45 = vrot.slane %v5025_v47, 4 }
 0x204   : > { %v1677_v10 = vrot.slane %v5160_v36, 4  ;;  %v1790_v31 = vrot.slane %v5121_v48, 4 }
 0x205   : > { %v3266_v8 = vsel %vm207_vm0, %v3263_v59, %v3264_v41 }
 0x206   : > { %v1682_v30 = vsel %vm207_vm0, %v1677_v10, %v1678_v18  ;;  %v3267_v35 = vsel %vm1215_vm2, %v3258_v53, %v3266_v8  ;;  %v3372_v60 = vpop.permute.xlu0 %3371  ;;  %v1213_v18 = vrot.slane %v5145_v43, 4 }
 0x207   : > { %v1683_v22 = vsel %vm1680_vm10, %v5160_v36, %v1682_v30  ;;  %v5172_v29 = vpop.permute.xlu1 %853  ;;  %3272 = vst [vmem:[#allocation3 + $0xc0] sm:$0xcc] %v3267_v35  ;;  %v3376_v2 = vrot.slane %v3372_v60, 4 }
 0x208   : > { %1687 = vst [vmem:[#allocation3 + $0x58] sm:$0xcc] %v1683_v22  ;;  %v859_v3 = vrot.slane %v5172_v29, 4 }
 0x209   : > { %v3378_v40 = vsel %vm207_vm0, %v3375_v24, %v3376_v2  ;;  %v3380_v41 = vsel %vm207_vm0, %v3376_v2, %v3377_v25 }
 0x20a   : > { %v3379_v39 = vsel %vm1329_vm11, %v5106_v58, %v3378_v40  ;;  %v3381_v44 = vsel %vm1329_vm11, %v3372_v60, %v3380_v41  ;;  %v2571_v6 = vpop.permute.xlu0 %2570  ;;  %v2024_v40 = vrot.slane %v5039_v56, 4 }
 0x20b   : > { %v5181_v15 = vpop.permute.xlu1 %974  ;;  %3384 = vst [vmem:[#allocation3 + $0xd0] sm:$0x33] %v3379_v39  ;;  %3385 = vst [vmem:[#allocation3 + $0xd8] sm:$0x33] %v3381_v44  ;;  %v2576_v49 = vrot.slane %v2571_v6, 4 }
 0x20c   : > { %v979_v13 = vrot.slane %v5181_v15, 4 }
 0x20d   : > { %v2579_v19 = vsel %vm207_vm0, %v2576_v49, %v2577_v11 }
 0x20e   : > { %v984_v46 = vsel %vm207_vm0, %v979_v13, %v980_v27  ;;  %v2580_v42 = vsel %vm516_vm3, %v2571_v6, %v2579_v19  ;;  %v1787_v0 = vpop.permute.xlu0 %1786  ;;  %v2375_v27 = vrot.slane %v5097_v1, 4 }
 0x20f   : > { %v985_v58 = vsel %vm982_vm1, %v5181_v15, %v984_v46  ;;  %v5193_v62 = vpop.permute.xlu1 %1086  ;;  %2585 = vst [vmem:[#allocation3 + $0x90] sm:$0xcc] %v2580_v42  ;;  %v1791_v53 = vrot.slane %v1787_v0, 4 }
 0x210   : > { %989 = vst [vmem:[#allocation3 + $0x28] sm:$0xcc] %v985_v58 }
 0x211   : > { %v1793_v63 = vsel %vm207_vm0, %v1790_v31, %v1791_v53  ;;  %v1796_v11 = vsel %vm207_vm0, %v1791_v53, %v1792_v45  ;;  %v512_v53 = vrot.slane %v5108_v7, 4 }
 0x212   : > { %v1795_v59 = vsel %vm1794_vm5, %v5121_v48, %v1793_v63  ;;  %v1797_v30 = vsel %vm1794_vm5, %v1787_v0, %v1796_v11  ;;  %v1903_v22 = vpop.permute.xlu0 %1902  ;;  %v4020_v35 = vld [vmem:[#allocation3 + $0xc4] ss:$16 sps:$4 sm:$0xff]   ;;  %v4022_v25 = vld [vmem:[#allocation3 + $0xcc] ss:$16 sps:$4 sm:$0xff]   ;;  %v4024_v24 = vld [vmem:[#allocation3 + $0xc0] ss:$16 sps:$4 sm:$0xff]  }
 0x213   : > { %v5201_v8 = vpop.permute.xlu1 %1207  ;;  %1800 = vst [vmem:[#allocation3 + $0x60] sm:$0x33] %v1795_v59  ;;  %1801 = vst [vmem:[#allocation3 + $0x68] sm:$0x33] %v1797_v30  ;;  %v1908_v60 = vrot.slane %v1903_v22, 4  ;;  %3569 = vmatprep.subr.bf16.mxu0 %v4020_v35  ;;  %3610 = vmatprep.subr.bf16.mxu1 %v4022_v25  ;;  %v1327_v30 = vrot.slane %v5050_v52, 4 }
 0x214   : > { %v1212_v47 = vrot.slane %v5201_v8, 4  ;;  %v4025_v2 = vld [vmem:[#allocation3 + $0xc8] ss:$16 sps:$4 sm:$0xff]   ;;  %3570 = vmatpush1.bf16.msra.mxu0 %v4024_v24  ;;  %v1325_v24 = vrot.slane %v5141_v33, 4 }
 0x215   : > { %v1911_v48 = vsel %vm207_vm0, %v1908_v60, %v1909_v37  ;;  %3611 = vmatpush1.bf16.msra.mxu1 %v4025_v2 }
 0x216   : > { %v1217_v43 = vsel %vm207_vm0, %v1212_v47, %v1213_v18  ;;  %v1913_v39 = vsel %vm1912_vm4, %v1903_v22, %v1911_v48  ;;  %v2019_v6 = vpop.permute.xlu0 %2018  ;;  %v2690_v18 = vrot.slane %v4980_v4, 4  ;;  %v2688_v4 = vrot.slane %v5052_v17, 4 }
 0x217   : > { %v1218_v41 = vsel %vm1215_vm2, %v5201_v8, %v1217_v43  ;;  %v2373_v44 = vpop.permute.xlu1 %2372  ;;  %1918 = vst [vmem:[#allocation3 + $0x60] sm:$0xcc] %v1913_v39  ;;  %v2023_v49 = vrot.slane %v2019_v6, 4  ;;  %vm1561_vm4 = vcmask 515072  }
 0x218   : > { %1222 = vst [vmem:[#allocation3 + $0x38] sm:$0xcc] %v1218_v41  ;;  %v2376_v37 = vrot.slane %v2373_v44, 4 }
 0x219   : > { %v2025_v46 = vsel %vm207_vm0, %v2022_v12, %v2023_v49  ;;  %v2028_v19 = vsel %vm207_vm0, %v2023_v49, %v2024_v40 }
 0x21a   : > { %v2380_v56 = vsel %vm207_vm0, %v2375_v27, %v2376_v37  ;;  %v2027_v58 = vsel %vm2026_vm6, %v5131_v51, %v2025_v46  ;;  %v2029_v42 = vsel %vm2026_vm6, %v2019_v6, %v2028_v19  ;;  %v2136_v45 = vpop.permute.xlu0 %2135  ;;  %v1559_v46 = vrot.slane %v5058_v34, 4 }
 0x21b   : > { %v510_v0 = vpop.permute.xlu1 %509  ;;  %v2381_v31 = vsel %vm2378_vm7, %v5097_v1, %v2380_v56  ;;  %2032 = vst [vmem:[#allocation3 + $0x70] sm:$0x33] %v2027_v58  ;;  %2033 = vst [vmem:[#allocation3 + $0x78] sm:$0x33] %v2029_v42  ;;  %v2141_v11 = vrot.slane %v2136_v45, 4  ;;  %v2919_v56 = vrot.slane %v4990_v61, 4 }
 0x21c   : > { %v513_v63 = vrot.slane %v510_v0, 4  ;;  %2385 = vst [vmem:[#allocation3 + $0x88] sm:$0xcc] %v2381_v31  ;;  %v2917_v61 = vrot.slane %v5075_v32, 4 }
 0x21d   : > { %v2144_v59 = vsel %vm207_vm0, %v2141_v11, %v2142_v26 }
 0x21e   : > { %v518_v51 = vsel %vm207_vm0, %v512_v53, %v513_v63  ;;  %v2146_v35 = vsel %vm2145_vm8, %v2136_v45, %v2144_v59  ;;  %v1322_v25 = vpop.permute.xlu0 %1321 }
 0x21f   : > { %v519_v22 = vsel %vm516_vm3, %v5108_v7, %v518_v51  ;;  %v2685_v60 = vpop.permute.xlu1 %2684  ;;  %2151 = vst [vmem:[#allocation3 + $0x70] sm:$0xcc] %v2146_v35  ;;  %v1326_v55 = vrot.slane %v1322_v25, 4  ;;  %v628_v7 = vrot.slane %v5041_v21, 4 }
 0x220   : > { %523 = vst [vmem:[#allocation3 + $0x8] sm:$0xcc] %v519_v22  ;;  %v2689_v2 = vrot.slane %v2685_v60, 4 }
 0x221   : > { %v1328_v43 = vsel %vm207_vm0, %v1325_v24, %v1326_v55  ;;  %v1331_v48 = vsel %vm207_vm0, %v1326_v55, %v1327_v30 }
 0x222   : > { %v2691_v26 = vsel %vm207_vm0, %v2688_v4, %v2689_v2  ;;  %v2693_v52 = vsel %vm207_vm0, %v2689_v2, %v2690_v18  ;;  %v1330_v39 = vsel %vm1329_vm11, %v5141_v33, %v1328_v43  ;;  %v1332_v44 = vsel %vm1329_vm11, %v1322_v25, %v1331_v48  ;;  %v1439_v12 = vpop.permute.xlu0 %1438 }
 0x223   : > { %v2692_v40 = vsel %vm630_vm12, %v5052_v17, %v2691_v26  ;;  %v2694_v41 = vsel %vm630_vm12, %v2685_v60, %v2693_v52  ;;  %v2800_v6 = vpop.permute.xlu1 %2799  ;;  %1335 = vst [vmem:[#allocation3 + $0x40] sm:$0x33] %v1330_v39  ;;  %1336 = vst [vmem:[#allocation3 + $0x48] sm:$0x33] %v1332_v44  ;;  %v1444_v49 = vrot.slane %v1439_v12, 4  ;;  %v861_v25 = vrot.slane %v5073_v20, 4 }
 0x224   : > { %2697 = vst [vmem:[#allocation3 + $0xa0] sm:$0x33] %v2692_v40  ;;  %2698 = vst [vmem:[#allocation3 + $0xa8] sm:$0x33] %v2694_v41  ;;  %v2805_v37 = vrot.slane %v2800_v6, 4  ;;  %v2255_v26 = vrot.slane %v5093_v16, 4 }
 0x225   : > { %v1447_v33 = vsel %vm207_vm0, %v1444_v49, %v1445_v14 }
 0x226   : > { %v2808_v17 = vsel %vm207_vm0, %v2805_v37, %v2806_v23  ;;  %v1448_v58 = vsel %vm1407_vm13, %v1439_v12, %v1447_v33  ;;  %v1554_v0 = vpop.permute.xlu0 %1553  ;;  %vm2259_vm13 = vcmask 384000  }
 0x227   : > { %v2809_v19 = vsel %vm749_vm15, %v2800_v6, %v2808_v17  ;;  %v2914_v42 = vpop.permute.xlu1 %2913  ;;  %1453 = vst [vmem:[#allocation3 + $0x40] sm:$0xcc] %v1448_v58  ;;  %v1558_v5 = vrot.slane %v1554_v0, 4 }
 0x228   : > { %2814 = vst [vmem:[#allocation3 + $0xa0] sm:$0xcc] %v2809_v19  ;;  %v2918_v23 = vrot.slane %v2914_v42, 4 }
 0x229   : > { %v1560_v34 = vsel %vm207_vm0, %v1557_v50, %v1558_v5  ;;  %v1563_v31 = vsel %vm207_vm0, %v1558_v5, %v1559_v46 }
 0x22a   : > { %v2920_v14 = vsel %vm207_vm0, %v2917_v61, %v2918_v23  ;;  %v2922_v45 = vsel %vm207_vm0, %v2918_v23, %v2919_v56  ;;  %v1562_v18 = vsel %vm1561_vm4, %v5153_v28, %v1560_v34  ;;  %v1564_v51 = vsel %vm1561_vm4, %v1554_v0, %v1563_v31  ;;  %v1671_v30 = vpop.permute.xlu0 %1670 }
 0x22b   : > { %v2921_v63 = vsel %vm863_vm14, %v5075_v32, %v2920_v14  ;;  %v2923_v11 = vsel %vm863_vm14, %v2914_v42, %v2922_v45  ;;  %v3029_v59 = vpop.permute.xlu1 %3028  ;;  %1567 = vst [vmem:[#allocation3 + $0x50] sm:$0x33] %v1562_v18  ;;  %1568 = vst [vmem:[#allocation3 + $0x58] sm:$0x33] %v1564_v51  ;;  %v1676_v35 = vrot.slane %v1671_v30, 4  ;;  %v2257_v28 = vrot.slane %v5027_v38, 4 }
 0x22c   : > { %2926 = vst [vmem:[#allocation3 + $0xb0] sm:$0x33] %v2921_v63  ;;  %2927 = vst [vmem:[#allocation3 + $0xb8] sm:$0x33] %v2923_v11  ;;  %v3034_v22 = vrot.slane %v3029_v59, 4  ;;  %v1094_v42 = vrot.slane %v5079_v54, 4 }
 0x22d   : > { %v1679_v32 = vsel %vm207_vm0, %v1676_v35, %v1677_v10  ;;  %v1092_v0 = vrot.slane %v5193_v62, 4  ;;  %v4035_v11 = vld [vmem:[#allocation3 + $0x6c] ss:$16 sps:$4 sm:$0xff]  }
 0x22e   : > { %v3037_v60 = vsel %vm207_vm0, %v3034_v22, %v3035_v57  ;;  %v1681_v24 = vsel %vm1680_vm10, %v1671_v30, %v1679_v32  ;;  %v856_v55 = vpop.permute.xlu0 %855 }
 0x22f   : > { %v3038_v4 = vsel %vm982_vm1, %v3029_v59, %v3037_v60  ;;  %v2252_v2 = vpop.permute.xlu1 %2251  ;;  %1686 = vst [vmem:[#allocation3 + $0x50] sm:$0xcc] %v1681_v24  ;;  %v860_v36 = vrot.slane %v856_v55, 4 }
 0x230   : > { %3043 = vst [vmem:[#allocation3 + $0xb0] sm:$0xcc] %v3038_v4  ;;  %v2256_v57 = vrot.slane %v2252_v2, 4 }
 0x231   : > { %v862_v20 = vsel %vm207_vm0, %v859_v3, %v860_v36  ;;  %v865_v52 = vsel %vm207_vm0, %v860_v36, %v861_v25  ;;  %v4040_v25 = vld [vmem:[#allocation3 + $0x68] ss:$16 sps:$4 sm:$0xff]  }
 0x232   : > { %v2258_v10 = vsel %vm207_vm0, %v2255_v26, %v2256_v57  ;;  %v2261_v38 = vsel %vm207_vm0, %v2256_v57, %v2257_v28  ;;  %v864_v40 = vsel %vm863_vm14, %v5172_v29, %v862_v20  ;;  %v866_v41 = vsel %vm863_vm14, %v856_v55, %v865_v52  ;;  %v973_v44 = vpop.permute.xlu0 %972  ;;  %v4043_v4 = vld [vmem:[#allocation3 + $0x4c] ss:$16 sps:$4 sm:$0xff]   ;;  %v4045_v26 = vld [vmem:[#allocation3 + $0x60] ss:$16 sps:$4 sm:$0xff]   ;;  %v4046_v3 = vld [vmem:[#allocation3 + $0x48] ss:$16 sps:$4 sm:$0xff]  }
 0x233   : > { %v2260_v43 = vsel %vm2259_vm13, %v5093_v16, %v2258_v10  ;;  %v2262_v48 = vsel %vm2259_vm13, %v2252_v2, %v2261_v38  ;;  %v2369_v39 = vpop.permute.xlu1 %2368  ;;  %v4026_v6 = vld [vmem:[#allocation3 + $0xac] ss:$16 sps:$4 sm:$0xff]   ;;  %v4028_v12 = vld [vmem:[#allocation3 + $0xa8] ss:$16 sps:$4 sm:$0xff]   ;;  %869 = vst [vmem:[#allocation3 + $0x20] sm:$0x33] %v864_v40 }
 0x234   : > { %2265 = vst [vmem:[#allocation3 + $0x80] sm:$0x33] %v2260_v43  ;;  %2266 = vst [vmem:[#allocation3 + $0x88] sm:$0x33] %v2262_v48  ;;  %v2374_v37 = vrot.slane %v2369_v39, 4  ;;  %v978_v49 = vrot.slane %v973_v44, 4  ;;  %3612 = vmatprep.subr.bf16.mxu1 %v4026_v6 }
 0x235   : > { %870 = vst [vmem:[#allocation3 + $0x28] sm:$0x33] %v866_v41  ;;  %3613 = vmatpush1.bf16.msra.mxu1 %v4028_v12 }
 0x236   : > { %v2377_v16 = vsel %vm207_vm0, %v2374_v37, %v2375_v27  ;;  %v981_v29 = vsel %vm207_vm0, %v978_v49, %v979_v13  ;;  %v1089_v46 = vpop.permute.xlu0 %1088  ;;  %v4047_v57 = vld [vmem:[#allocation3 + $0x44] ss:$16 sps:$4 sm:$0xff]   ;;  %v4051_v20 = vld [vmem:[#allocation3 + $0x40] ss:$16 sps:$4 sm:$0xff]  }
 0x237   : > { %v2379_v56 = vsel %vm2378_vm7, %v2369_v39, %v2377_v16  ;;  %v983_v17 = vsel %vm982_vm1, %v973_v44, %v981_v29  ;;  %v506_v33 = vpop.permute.xlu1 %505  ;;  %v4029_v19 = vld [vmem:[#allocation3 + $0xa4] ss:$16 sps:$4 sm:$0xff]   ;;  %v4031_v58 = vld [vmem:[#allocation3 + $0xa0] ss:$16 sps:$4 sm:$0xff]   ;;  %v1093_v27 = vrot.slane %v1089_v46, 4 }
 0x238   : > { %2384 = vst [vmem:[#allocation3 + $0x80] sm:$0xcc] %v2379_v56  ;;  %988 = vst [vmem:[#allocation3 + $0x20] sm:$0xcc] %v983_v17  ;;  %v511_v1 = vrot.slane %v506_v33, 4  ;;  %3571 = vmatprep.subr.bf16.mxu0 %v4029_v19 }
 0x239   : > { %v1095_v13 = vsel %vm207_vm0, %v1092_v0, %v1093_v27  ;;  %v1098_v61 = vsel %vm207_vm0, %v1093_v27, %v1094_v42  ;;  %3572 = vmatpush1.bf16.msra.mxu0 %v4031_v58  ;;  %v3388_v37 = vld [vmem:[%s5339_s1] sm:$0xf] }
 0x23a   : > { %v515_v15 = vsel %vm207_vm0, %v511_v1, %v512_v53  ;;  %v1097_v54 = vsel %vm1096_vm9, %v5193_v62, %v1095_v13  ;;  %v1099_v23 = vsel %vm1096_vm9, %v1089_v46, %v1098_v61  ;;  %v1206_v14 = vpop.permute.xlu0 %1205  ;;  %v626_v53 = vrot.slane %v5112_v9, 4 }
 0x23b   : > { %v517_v50 = vsel %vm516_vm3, %v506_v33, %v515_v15  ;;  %v623_v5 = vpop.permute.xlu1 %622  ;;  %v4032_v45 = vld [vmem:[#allocation3 + $0x8c] ss:$16 sps:$4 sm:$0xff]   ;;  %v4034_v34 = vld [vmem:[#allocation3 + $0x88] ss:$16 sps:$4 sm:$0xff]   ;;  %1102 = vst [vmem:[#allocation3 + $0x30] sm:$0x33] %v1097_v54 }
 0x23c   : > { %522 = vst [vmem:[#allocation3] sm:$0xcc] %v517_v50  ;;  %1103 = vst [vmem:[#allocation3 + $0x38] sm:$0x33] %v1099_v23  ;;  %v627_v31 = vrot.slane %v623_v5, 4  ;;  %v1211_v63 = vrot.slane %v1206_v14, 4  ;;  %3614 = vmatprep.subr.bf16.mxu1 %v4032_v45 }
 0x23d   : > { %3615 = vmatpush1.bf16.msra.mxu1 %v4034_v34 }
 0x23e   : > { %v629_v18 = vsel %vm207_vm0, %v626_v53, %v627_v31  ;;  %v632_v62 = vsel %vm207_vm0, %v627_v31, %v628_v7  ;;  %v1214_v51 = vsel %vm207_vm0, %v1211_v63, %v1212_v47  ;;  %v742_v35 = vpop.permute.xlu0 %741  ;;  %3616 = vmatprep.subr.bf16.mxu1 %v4035_v11  ;;  %v4041_v47 = vld [vmem:[#allocation3 + $0x64] ss:$16 sps:$4 sm:$0xff]  }
 0x23f   : > { %v631_v21 = vsel %vm630_vm12, %v5112_v9, %v629_v18  ;;  %v633_v59 = vsel %vm630_vm12, %v623_v5, %v632_v62  ;;  %v1216_v30 = vsel %vm1215_vm2, %v1206_v14, %v1214_v51  ;;  %v740_v22 = vpop.permute.xlu1 %739  ;;  %v4037_v60 = vld [vmem:[#allocation3 + $0x84] ss:$16 sps:$4 sm:$0xff]   ;;  %v4039_v32 = vld [vmem:[#allocation3 + $0x80] ss:$16 sps:$4 sm:$0xff]   ;;  %v746_v8 = vrot.slane %v742_v35, 4 }
 0x240   : > { %636 = vst [vmem:[#allocation3 + $0x10] sm:$0x33] %v631_v21  ;;  %637 = vst [vmem:[#allocation3 + $0x18] sm:$0x33] %v633_v59  ;;  %v745_v28 = vrot.slane %v740_v22, 4  ;;  %3573 = vmatprep.subr.bf16.mxu0 %v4037_v60 }
 0x241   : > { %1221 = vst [vmem:[#allocation3 + $0x30] sm:$0xcc] %v1216_v30  ;;  %3574 = vmatpush1.bf16.msra.mxu0 %v4039_v32  ;;  %3617 = vmatpush1.bf16.msra.mxu1 %v4040_v25 }
 0x242   : > { %v748_v9 = vsel %vm207_vm0, %v745_v28, %v746_v8  ;;  %3575 = vmatprep.subr.bf16.mxu0 %v4041_v47  ;;  %3618 = vmatprep.subr.bf16.mxu1 %v4043_v4 }
 0x243   : > { %v750_v24 = vsel %vm749_vm15, %v740_v22, %v748_v9  ;;  %v744_v2 = vpop.permute.xlu1 %743  ;;  %v4049_v36 = vld [vmem:[#allocation3 + $0x2c] ss:$16 sps:$4 sm:$0xff]   ;;  %v4052_v52 = vld [vmem:[#allocation3 + $0x28] ss:$16 sps:$4 sm:$0xff]   ;;  %v3389_v39 = vld [vmem:[#allocation3] sm:$0xff] }
 0x244   : > { %755 = vst [vmem:[#allocation3 + $0x10] sm:$0xcc] %v750_v24  ;;  %v747_v55 = vrot.slane %v744_v2, 4 }
 0x245   : > { %3576 = vmatpush1.bf16.msra.mxu0 %v4045_v26  ;;  %3619 = vmatpush1.bf16.msra.mxu1 %v4046_v3 }
 0x246   : > { %v751_v10 = vsel %vm207_vm0, %v746_v8, %v747_v55  ;;  %3577 = vmatprep.subr.bf16.mxu0 %v4047_v57  ;;  %3620 = vmatprep.subr.bf16.mxu1 %v4049_v36 }
 0x247   : > { %v752_v38 = vsel %vm749_vm15, %v742_v35, %v751_v10 }
 0x248   : > { %756 = vst [vmem:[#allocation3 + $0x18] sm:$0xcc] %v752_v38  ;;  %v4053_v43 = vld [vmem:[#allocation3 + $0x24] ss:$16 sps:$4 sm:$0xff]   ;;  %v4055_v48 = vld [vmem:[#allocation3 + $0x20] ss:$16 sps:$4 sm:$0xff]  }
 0x249   : > { %3578 = vmatpush1.bf16.msra.mxu0 %v4051_v20  ;;  %3621 = vmatpush1.bf16.msra.mxu1 %v4052_v52 }
 0x24a   : > { %3579 = vmatprep.subr.bf16.mxu0 %v4053_v43 }
 0x24b   : > { %v3391_v40 = vld [vmem:[#allocation3 + $0x10] sm:$0xff]  ;;  %v3421_v49 = vpop.permute.xlu0 %3420 }
 0x24c   : > { %v4056_v41 = vld [vmem:[#allocation3 + $0x4] ss:$16 sps:$4 sm:$0xff]   ;;  %v3831_v12 = vcombine.low %v3389_v39, %v3391_v40 }
 0x24d   : > { %3580 = vmatpush1.bf16.msra.mxu0 %v4055_v48 }
 0x24e   : > { %3581 = vmatprep.subr.bf16.mxu0 %v4056_v41 }
 0x24f   : > { %v4058_v44 = vld [vmem:[#allocation3 + $0xc] ss:$16 sps:$4 sm:$0xff]   ;;  %v4060_v6 = vld [vmem:[#allocation3 + $0x8] ss:$16 sps:$4 sm:$0xff]  }
 0x250   : > { %3622 = vmatprep.subr.bf16.mxu1 %v4058_v44 }
 0x251   : > { %3582 = vmatpush1.bf16.msra.mxu0 %v3831_v12  ;;  %3623 = vmatpush1.bf16.msra.mxu1 %v4060_v6 }
 0x254   : > { %3859 = vmatmul.mubr.msk.bf16.vlgmr.msra.gmra.mxu0 %vm1096_vm9, %v3388_v37  ;;  %3860 = vmatmul.mubr.msk.bf16.vlgmr.msra.gmra.mxu1 %vm1096_vm9, %v3388_v37 }
 0x314   : > { %v3601_v16 = vpop.f32.mrf.mxu0  ;;  %v3642_v29 = vpop.f32.mrf.mxu1 }
 0x315   : > { %v3602_v56 = vadd.f32 %v3601_v16, %v3421_v49  ;;  %v3643_v17 = vadd.f32 %v3642_v29, %v3421_v49 }
 0x316   : > { %v3603_v33 = vpop.f32.mrf.mxu0  ;;  %v3644_v46 = vpop.f32.mrf.mxu1 }
 0x317   : > { %3649 = vst [vmem:[%s197_s19] sm:$0xff] %v3602_v56  ;;  %3651 = vst [vmem:[%s197_s19 + $0x10] sm:$0xff] %v3643_v17  ;;  %v3604_v19 = vadd.f32 %v3603_v33, %v3421_v49  ;;  %v3645_v58 = vadd.f32 %v3644_v46, %v3421_v49 }
 0x318   : > { %v3605_v42 = vpop.f32.mrf.mxu0  ;;  %v3646_v0 = vpop.f32.mrf.mxu1 }
 0x319   : > { %3650 = vst [vmem:[%s197_s19 + $0x8] sm:$0xff] %v3604_v19  ;;  %3652 = vst [vmem:[%s197_s19 + $0x18] sm:$0xff] %v3645_v58 }
 0x31a   : > { %v3606_v1 = vpop.f32.mrf.mxu0  ;;  %v3647_v27 = vpop.f32.mrf.mxu1 }
 0x31b PF: > { %s14_s15 = sadd.s32 1, %s4071_s15  }
 0x31c   : > { %p11_p4 = scmp.ge.s32.totalorder %s14_s15, 4  }
 0x31e   :  { %13 = sbr.rel (!%p11_p4) target bundleno = 1 (0x1), region = 66 }

</bundles_post_ra>
